<compile_context>
chip_gen: v6e
topology: v6e:2x2x1
jax: 0.10.0
libtpu: 0.0.40
codegen_flags: <defaults>
</compile_context>

<pallas_src>
import math
import functools

import jax
import jax.numpy as jnp
from jax import lax
from jax.experimental import pallas as pl
from jax.experimental.pallas import tpu as pltpu

# ----------------------------- small config ---------------------------------
B = 2          # batch
T = 8          # sequence length (== n_ctx here)
D = 32         # n_embd
H = 4          # n_head
DH = D // H    # head dim
N_LAYER = 2
VOCAB = 64
N_POS = 32
LORA_R = 4
LORA_ALPHA = 8
EPS = 1e-5     # layer_norm_epsilon
BT = B * T


# ----------------------------- kernel helpers --------------------------------
def _layer_norm(h, w, b, eps):
    u = jnp.mean(h, axis=-1, keepdims=True)
    s = jnp.mean((h - u) ** 2, axis=-1, keepdims=True)
    return ((h - u) / jnp.sqrt(s + eps)) * w + b


def _gelu(x):
    c = math.sqrt(2.0 / math.pi)
    return 0.5 * x * (1.0 + jnp.tanh(c * (x + 0.044715 * x * x * x)))


# ----------------------------- fused GPT-2 kernel -----------------------------
def gpt2_stack_kernel(x0_ref,
                      ln1w_ref, ln1b_ref,
                      wqkv_ref, bqkv_ref,
                      wo_ref, bo_ref,
                      ln2w_ref, ln2b_ref,
                      wfc_ref, bfc_ref, wp2_ref, bp2_ref,
                      lnfw_ref, lnfb_ref,
                      hout_ref, kv_ref,
                      ctx_sc,
                      *, n_head, eps):
    layer = pl.program_id(1)
    n_layers = pl.num_programs(1)
    bf16 = jnp.bfloat16

    # Load the embedding-sum hidden into the VMEM-resident output block once
    # per batch tile; it then carries the residual stream across all layers.
    @pl.when(layer == 0)
    def _():
        hout_ref[...] = x0_ref[...]

    x = hout_ref[...]                    # (T, D) f32 residual stream
    t, d = x.shape
    d_head = d // n_head
    inv_sqrt_dh = 1.0 / math.sqrt(d_head)

    # ---- ln_1 + single fused QKV matmul (LoRA already merged into W) ----
    h = _layer_norm(x, ln1w_ref[0], ln1b_ref[0], eps)
    qkv = jnp.dot(h.astype(bf16), wqkv_ref[0],
                  preferred_element_type=jnp.float32) + bqkv_ref[0]   # (T, 3D) f32

    # present K|V packed into a single lane-dense (T, 2D) slab (one store);
    # wrapper reshapes to the torch (2, B, H, T, DH) present layout.
    kv_ref[0] = qkv[:, d:3 * d]

    # ---- plain causal mask for this batch's (T, T) scores ----
    row = lax.broadcasted_iota(jnp.int32, (t, t), 0)
    col = lax.broadcasted_iota(jnp.int32, (t, t), 1)
    mask = row >= col

    # ---- scaled causal attention, static head unroll ----
    #  - 1/sqrt(DH) folded into q before QK^T
    #  - softmax max-subtract / exp / sum in f32, divide via EUP reciprocal
    #  - per-head ctx written into a (T, D) scratch; ONE c_proj matmul after.
    dn = (((1,), (1,)), ((), ()))        # contract last axes, no batch dims
    for hd in range(n_head):
        lo = hd * d_head
        qh = (qkv[:, lo:lo + d_head] * inv_sqrt_dh).astype(bf16)
        kh = qkv[:, d + lo:d + lo + d_head].astype(bf16)
        vh = qkv[:, 2 * d + lo:2 * d + lo + d_head].astype(bf16)
        s = lax.dot_general(qh, kh, dn, preferred_element_type=jnp.float32)
        s = jnp.where(mask, s, -1e10)
        s = s - jnp.max(s, axis=-1, keepdims=True)
        e = jnp.exp(s)
        p = e * pl.reciprocal(jnp.sum(e, axis=-1, keepdims=True), approx=True)
        ctx_sc[:, lo:lo + d_head] = jnp.dot(p.astype(bf16), vh,
                                            preferred_element_type=jnp.float32)
    a = jnp.dot(ctx_sc[...].astype(bf16), wo_ref[0],
                preferred_element_type=jnp.float32) + bo_ref[0]
    x1 = x + a

    # ---- ln_2 + MLP (tanh-gelu) + residual ----
    h2 = _layer_norm(x1, ln2w_ref[0], ln2b_ref[0], eps)
    fc = jnp.dot(h2.astype(bf16), wfc_ref[0],
                 preferred_element_type=jnp.float32) + bfc_ref[0]
    fc = _gelu(fc)
    m = jnp.dot(fc.astype(bf16), wp2_ref[0],
                preferred_element_type=jnp.float32) + bp2_ref[0]
    x2 = x1 + m

    # carry the hidden in the resident output block; ln_f fused in-place on
    # the last layer of this batch tile.
    @pl.when(layer == n_layers - 1)
    def _():
        hout_ref[...] = _layer_norm(x2, lnfw_ref[...], lnfb_ref[...], eps)

    @pl.when(layer < n_layers - 1)
    def _():
        hout_ref[...] = x2


def run_gpt2_stack(x0, stk, lnf_w, lnf_b):
    def rep(shape):
        n = len(shape)
        return pl.BlockSpec(shape, lambda b, l, _n=n: (0,) * _n)

    def per_layer(trailing):
        n = len(trailing)
        return pl.BlockSpec((1,) + tuple(trailing),
                            lambda b, l, _n=n: (l,) + (0,) * _n)

    in_specs = [
        pl.BlockSpec((T, D), lambda b, l: (b, 0)),      # x0 (embedding sum), per-batch tile
        per_layer((1, D)), per_layer((1, D)),           # ln1 w, b
        per_layer((D, 3 * D)), per_layer((1, 3 * D)),   # fused Wqkv (bf16), bqkv
        per_layer((D, D)), per_layer((1, D)),           # Wo (c_proj, bf16), bo
        per_layer((1, D)), per_layer((1, D)),           # ln2 w, b
        per_layer((D, 4 * D)), per_layer((1, 4 * D)),   # Wfc (bf16), bfc
        per_layer((4 * D, D)), per_layer((1, D)),       # Wproj2 (bf16), bproj2
        rep((1, D)), rep((1, D)),                       # ln_f w, b
    ]
    out_specs = [
        pl.BlockSpec((T, D), lambda b, l: (b, 0)),             # final hidden (resident per batch)
        pl.BlockSpec((1, T, 2 * D), lambda b, l: (l, b, 0)),   # packed K|V slab per (layer, batch)
    ]
    out_shape = (
        jax.ShapeDtypeStruct((BT, D), jnp.float32),
        jax.ShapeDtypeStruct((N_LAYER, BT, 2 * D), jnp.float32),
    )

    # advisory cost estimate for the XLA scheduler
    flops_bl = (2 * T * D * 3 * D            # fused QKV
                + 4 * T * T * D              # QK^T + PV over all heads
                + 2 * T * D * D              # c_proj
                + 2 * T * D * 4 * D          # MLP fc
                + 2 * T * 4 * D * D)         # MLP proj
    flops = B * N_LAYER * flops_bl
    transcendentals = B * N_LAYER * (H * T * T + T * 4 * D + H * T)
    w_bytes_layer = (D * 3 * D + D * D + D * 4 * D + 4 * D * D) * 2 \
        + (2 * D + 3 * D + D + 2 * D + 4 * D + D) * 4
    bytes_accessed = (B * N_LAYER * w_bytes_layer
                      + 2 * BT * D * 4                 # x0 in + hidden out
                      + N_LAYER * BT * 2 * D * 4       # presents
                      + 2 * D * 4)                     # ln_f params

    kern = functools.partial(gpt2_stack_kernel, n_head=H, eps=EPS)
    return pl.pallas_call(
        kern,
        grid=(B, N_LAYER),
        in_specs=in_specs,
        out_specs=out_specs,
        out_shape=out_shape,
        scratch_shapes=[pltpu.VMEM((T, D), jnp.float32)],   # assembled per-head ctx
        compiler_params=pltpu.CompilerParams(
            dimension_semantics=("parallel", "arbitrary"),   # batch parallel, layers sequential
            vmem_limit_bytes=64 * 1024 * 1024),
        cost_estimate=pl.CostEstimate(flops=flops,
                                      transcendentals=transcendentals,
                                      bytes_accessed=bytes_accessed),
    )(x0,
      stk["ln1_w"], stk["ln1_b"],
      stk["wqkv"], stk["bqkv"],
      stk["wo"], stk["bo"],
      stk["ln2_w"], stk["ln2_b"],
      stk["wfc"], stk["bfc"], stk["wp2"], stk["bp2"],
      lnf_w, lnf_b)


# ----------------------------- parameters ------------------------------------
def init_params(key):
    keys = jax.random.split(key, 2 + N_LAYER)
    params = {
        "wte": jax.random.normal(keys[0], (VOCAB, D), jnp.float32) * 0.02,
        "wpe": jax.random.normal(keys[1], (N_POS, D), jnp.float32) * 0.02,
        "lnf_w": jnp.ones((1, D), jnp.float32),
        "lnf_b": jnp.zeros((1, D), jnp.float32),
    }
    scaling = LORA_ALPHA / LORA_R
    names = ["ln1_w", "ln1_b", "wqkv", "bqkv", "wo", "bo",
             "ln2_w", "ln2_b", "wfc", "bfc", "wp2", "bp2"]
    acc = {n: [] for n in names}
    for l in range(N_LAYER):
        k = jax.random.split(keys[2 + l], 6)
        c_attn_w = jax.random.normal(k[0], (D, 3 * D), jnp.float32) * 0.02
        c_attn_b = jnp.zeros((3 * D,), jnp.float32)
        # LoRA params, matching module init: lora_A = zeros, lora_B = kaiming-uniform
        lora_A_q = jnp.zeros((LORA_R, D), jnp.float32)
        lora_A_v = jnp.zeros((LORA_R, D), jnp.float32)
        bound = 1.0 / math.sqrt(LORA_R)
        lora_B_q = jax.random.uniform(k[1], (D, LORA_R), jnp.float32, -bound, bound)
        lora_B_v = jax.random.uniform(k[2], (D, LORA_R), jnp.float32, -bound, bound)

        Wq_raw = c_attn_w[:, :D]
        Wk_raw = c_attn_w[:, D:2 * D]
        Wv_raw = c_attn_w[:, 2 * D:]
        # adapted_W.T = W_raw + scaling * W_raw @ A.T @ B.T   (x @ W orientation)
        Wq = Wq_raw + scaling * (Wq_raw @ lora_A_q.T) @ lora_B_q.T
        Wv = Wv_raw + scaling * (Wv_raw @ lora_A_v.T) @ lora_B_v.T

        acc["ln1_w"].append(jnp.ones((1, D), jnp.float32))
        acc["ln1_b"].append(jnp.zeros((1, D), jnp.float32))
        # matmul weights stored in bf16 (halves HBM->VMEM DMA; MXU runs bf16)
        acc["wqkv"].append(jnp.concatenate([Wq, Wk_raw, Wv], axis=1).astype(jnp.bfloat16))
        acc["bqkv"].append(c_attn_b.reshape(1, 3 * D))
        acc["wo"].append((jax.random.normal(k[3], (D, D), jnp.float32) * 0.02).astype(jnp.bfloat16))
        acc["bo"].append(jnp.zeros((1, D), jnp.float32))
        acc["ln2_w"].append(jnp.ones((1, D), jnp.float32))
        acc["ln2_b"].append(jnp.zeros((1, D), jnp.float32))
        acc["wfc"].append((jax.random.normal(k[4], (D, 4 * D), jnp.float32) * 0.02).astype(jnp.bfloat16))
        acc["bfc"].append(jnp.zeros((1, 4 * D), jnp.float32))
        acc["wp2"].append((jax.random.normal(k[5], (4 * D, D), jnp.float32) * 0.02).astype(jnp.bfloat16))
        acc["bp2"].append(jnp.zeros((1, D), jnp.float32))
    params["stacked"] = {n: jnp.stack(v, axis=0) for n, v in acc.items()}
    return params


# ----------------------------- full model forward ----------------------------
def gpt2_forward(params, input_ids):
    Bb, Tt = input_ids.shape
    pos = jnp.arange(Tt)
    # glue: embedding gathers + LoRA merge (done in init) stay in plain JAX
    hidden = params["wte"][input_ids] + params["wpe"][pos][None, :, :]   # (B, T, D)
    x0 = hidden.reshape(Bb * Tt, D)

    hidden_out, kv = run_gpt2_stack(x0, params["stacked"],
                                    params["lnf_w"], params["lnf_b"])

    hidden_out = hidden_out.reshape(Bb, Tt, D)
    # presents: torch layout per layer = stack(key.transpose(-2,-1), value) = (2, B, H, T, DH)
    # packed slab layout is [K(D) | V(D)] per row -> (L, B, T, 2, H, DH) -> (L, 2, B, H, T, DH)
    kv = kv.reshape(N_LAYER, Bb, Tt, 2, H, DH).transpose(0, 3, 1, 4, 2, 5)
    presents = [kv[l] for l in range(N_LAYER)]
    return hidden_out, presents


# ----------------------------- JAX reference ----------------------------------
# Mirrors the torch module math with the SAME mixed-precision policy as the
# kernel (bf16 matmul operands, f32 accumulation, f32 LN/softmax/GELU), so the
# comparison isolates structural correctness instead of bf16 rounding.
def ref_forward(params, input_ids):
    Bb, Tt = input_ids.shape
    pos = jnp.arange(Tt)
    h = params["wte"][input_ids] + params["wpe"][pos][None, :, :]
    mask = jnp.tril(jnp.ones((Tt, Tt), jnp.float32))
    S = params["stacked"]
    bf = jnp.bfloat16

    def mm(a, w):
        return jnp.dot(a.astype(bf), w.astype(bf), preferred_element_type=jnp.float32)

    def ln(x, w, b):
        u = x.mean(-1, keepdims=True)
        s = ((x - u) ** 2).mean(-1, keepdims=True)
        return (x - u) / jnp.sqrt(s + EPS) * w.reshape(-1) + b.reshape(-1)

    presents = []
    for l in range(N_LAYER):
        x = ln(h, S["ln1_w"][l], S["ln1_b"][l])
        qkv = mm(x, S["wqkv"][l]) + S["bqkv"][l].reshape(-1)
        q, k, v = qkv[..., :D], qkv[..., D:2 * D], qkv[..., 2 * D:]
        qh = q.reshape(Bb, Tt, H, DH).transpose(0, 2, 1, 3)
        kh = k.reshape(Bb, Tt, H, DH).transpose(0, 2, 1, 3)
        vh = v.reshape(Bb, Tt, H, DH).transpose(0, 2, 1, 3)
        presents.append(jnp.stack([kh, vh], axis=0))    # (2, B, H, T, DH)
        w = jnp.einsum('bhqd,bhkd->bhqk', qh.astype(bf), kh.astype(bf),
                       preferred_element_type=jnp.float32) / math.sqrt(DH)
        w = w * mask - 1e10 * (1.0 - mask)
        w = jax.nn.softmax(w, axis=-1)
        a = jnp.einsum('bhqk,bhkd->bhqd', w.astype(bf), vh.astype(bf),
                       preferred_element_type=jnp.float32)
        a = a.transpose(0, 2, 1, 3).reshape(Bb, Tt, D)
        a = mm(a, S["wo"][l]) + S["bo"][l].reshape(-1)
        h = h + a
        x2 = ln(h, S["ln2_w"][l], S["ln2_b"][l])
        fc = mm(x2, S["wfc"][l]) + S["bfc"][l].reshape(-1)
        fc = 0.5 * fc * (1.0 + jnp.tanh(math.sqrt(2.0 / math.pi)
                                        * (fc + 0.044715 * fc * fc * fc)))
        m = mm(fc, S["wp2"][l]) + S["bp2"][l].reshape(-1)
        h = h + m
    return ln(h, params["lnf_w"], params["lnf_b"]), presents


# ----------------------------- main -------------------------------------------
if __name__ == "__main__":
    key = jax.random.PRNGKey(0)
    pkey, ikey = jax.random.split(key)
    params = init_params(pkey)
    input_ids = jax.random.randint(ikey, (B, T), 0, VOCAB)

    hidden, presents = gpt2_forward(params, input_ids)
    hidden = jax.block_until_ready(hidden)
    for p in presents:
        jax.block_until_ready(p)

    assert hidden.shape == (B, T, D)
    assert len(presents) == N_LAYER and presents[0].shape == (2, B, H, T, DH)

    ref_h, ref_presents = ref_forward(params, input_ids)
    # tolerance covers approx-reciprocal softmax + MXU accumulation-order deltas
    assert jnp.allclose(hidden, ref_h, atol=2e-2, rtol=2e-2), "hidden mismatch vs. JAX reference"
    for p, rp in zip(presents, ref_presents):
        assert jnp.allclose(p, rp, atol=2e-2, rtol=2e-2), "present K/V mismatch vs. JAX reference"

    print("KERNEL_OK")
</pallas_src>

<mosaic_0001>
module attributes {stable_mosaic.version = 11 : i64} {
  func.func @gpt2_stack_kernel(%arg0: i32, %arg1: i32, %arg2: memref<8x32xf32, #tpu.memory_space<vmem>>, %arg3: memref<1x1x32xf32, #tpu.memory_space<vmem>>, %arg4: memref<1x1x32xf32, #tpu.memory_space<vmem>>, %arg5: memref<1x32x96xbf16, #tpu.memory_space<vmem>>, %arg6: memref<1x1x96xf32, #tpu.memory_space<vmem>>, %arg7: memref<1x32x32xbf16, #tpu.memory_space<vmem>>, %arg8: memref<1x1x32xf32, #tpu.memory_space<vmem>>, %arg9: memref<1x1x32xf32, #tpu.memory_space<vmem>>, %arg10: memref<1x1x32xf32, #tpu.memory_space<vmem>>, %arg11: memref<1x32x128xbf16, #tpu.memory_space<vmem>>, %arg12: memref<1x1x128xf32, #tpu.memory_space<vmem>>, %arg13: memref<1x128x32xbf16, #tpu.memory_space<vmem>>, %arg14: memref<1x1x32xf32, #tpu.memory_space<vmem>>, %arg15: memref<1x32xf32, #tpu.memory_space<vmem>>, %arg16: memref<1x32xf32, #tpu.memory_space<vmem>>, %arg17: memref<8x32xf32, #tpu.memory_space<vmem>>, %arg18: memref<1x8x64xf32, #tpu.memory_space<vmem>>, %arg19: memref<8x32xf32, #tpu.memory_space<vmem>>) attributes {dimension_semantics = [#tpu.dimension_semantics<parallel>, #tpu.dimension_semantics<arbitrary>], iteration_bounds = array<i64: 2, 2>, scalar_prefetch = 0 : i64, scratch_operands = 1 : i64, tpu.core_type = #tpu.core_type<tc>, window_params = [{transform_indices = @transform_0, window_bounds = array<i64: 8, 32>}, {transform_indices = @transform_1, window_bounds = array<i64: 1, 1, 32>}, {transform_indices = @transform_2, window_bounds = array<i64: 1, 1, 32>}, {transform_indices = @transform_3, window_bounds = array<i64: 1, 32, 96>}, {transform_indices = @transform_4, window_bounds = array<i64: 1, 1, 96>}, {transform_indices = @transform_5, window_bounds = array<i64: 1, 32, 32>}, {transform_indices = @transform_6, window_bounds = array<i64: 1, 1, 32>}, {transform_indices = @transform_7, window_bounds = array<i64: 1, 1, 32>}, {transform_indices = @transform_8, window_bounds = array<i64: 1, 1, 32>}, {transform_indices = @transform_9, window_bounds = array<i64: 1, 32, 128>}, {transform_indices = @transform_10, window_bounds = array<i64: 1, 1, 128>}, {transform_indices = @transform_11, window_bounds = array<i64: 1, 128, 32>}, {transform_indices = @transform_12, window_bounds = array<i64: 1, 1, 32>}, {pipeline_mode = #tpu.pipeline_mode<synchronous>, transform_indices = @transform_13, window_bounds = array<i64: 1, 32>}, {pipeline_mode = #tpu.pipeline_mode<synchronous>, transform_indices = @transform_14, window_bounds = array<i64: 1, 32>}, {transform_indices = @transform_15, window_bounds = array<i64: 8, 32>}, {transform_indices = @transform_16, window_bounds = array<i64: 1, 8, 64>}]} {
    %c0_i32 = arith.constant 0 : i32
    %0 = arith.cmpi eq, %arg1, %c0_i32 : i32
    %1 = arith.extui %0 : i1 to i32
    %c0_i32_0 = arith.constant 0 : i32
    %2 = arith.cmpi ne, %1, %c0_i32_0 : i32
    scf.if %2 {
      %c0_92 = arith.constant 0 : index
      %c0_93 = arith.constant 0 : index
      %213 = vector.load %arg2[%c0_92, %c0_93] : memref<8x32xf32, #tpu.memory_space<vmem>>, vector<8x32xf32>
      %c0_94 = arith.constant 0 : index
      %c0_95 = arith.constant 0 : index
      %214 = vector.load %arg17[%c0_94, %c0_95] : memref<8x32xf32, #tpu.memory_space<vmem>>, vector<8x32xf32>
      tpu.vector_store %arg17[%c0_94, %c0_95], %213 {strides = array<i32>} : memref<8x32xf32, #tpu.memory_space<vmem>>, vector<8x32xf32>,
    } else {
    }
    %c0 = arith.constant 0 : index
    %c0_1 = arith.constant 0 : index
    %3 = vector.load %arg17[%c0, %c0_1] : memref<8x32xf32, #tpu.memory_space<vmem>>, vector<8x32xf32>
    %c0_2 = arith.constant 0 : index
    %c0_3 = arith.constant 0 : index
    %c0_4 = arith.constant 0 : index
    %4 = vector.load %arg3[%c0_2, %c0_3, %c0_4] : memref<1x1x32xf32, #tpu.memory_space<vmem>>, vector<1x1x32xf32>
    %5 = vector.shape_cast %4 : vector<1x1x32xf32> to vector<1x32xf32>
    %c0_5 = arith.constant 0 : index
    %c0_6 = arith.constant 0 : index
    %c0_7 = arith.constant 0 : index
    %6 = vector.load %arg4[%c0_5, %c0_6, %c0_7] : memref<1x1x32xf32, #tpu.memory_space<vmem>>, vector<1x1x32xf32>
    %7 = vector.shape_cast %6 : vector<1x1x32xf32> to vector<1x32xf32>
    %cst = arith.constant dense<0.000000e+00> : vector<8xf32>
    %8 = vector.multi_reduction <add>, %3, %cst [1] : vector<8x32xf32> to vector<8xf32>
    %9 = vector.shape_cast %8 : vector<8xf32> to vector<8x1xf32>
    %cst_8 = arith.constant 3.200000e+01 : f32
    %10 = vector.broadcast %cst_8 : f32 to vector<8x1xf32>
    %11 = arith.divf %9, %10 : vector<8x1xf32>
    %12 = vector.broadcast %11 : vector<8x1xf32> to vector<8x32xf32>
    %13 = arith.subf %3, %12 : vector<8x32xf32>
    %14 = arith.mulf %13, %13 : vector<8x32xf32>
    %cst_9 = arith.constant dense<0.000000e+00> : vector<8xf32>
    %15 = vector.multi_reduction <add>, %14, %cst_9 [1] : vector<8x32xf32> to vector<8xf32>
    %16 = vector.shape_cast %15 : vector<8xf32> to vector<8x1xf32>
    %cst_10 = arith.constant 3.200000e+01 : f32
    %17 = vector.broadcast %cst_10 : f32 to vector<8x1xf32>
    %18 = arith.divf %16, %17 : vector<8x1xf32>
    %19 = vector.broadcast %11 : vector<8x1xf32> to vector<8x32xf32>
    %20 = arith.subf %3, %19 : vector<8x32xf32>
    %cst_11 = arith.constant 9.99999974E-6 : f32
    %21 = vector.broadcast %cst_11 : f32 to vector<8x1xf32>
    %22 = arith.addf %18, %21 : vector<8x1xf32>
    %23 = math.sqrt %22 : vector<8x1xf32>
    %24 = vector.broadcast %23 : vector<8x1xf32> to vector<8x32xf32>
    %25 = arith.divf %20, %24 : vector<8x32xf32>
    %26 = vector.broadcast %5 : vector<1x32xf32> to vector<8x32xf32>
    %27 = arith.mulf %25, %26 : vector<8x32xf32>
    %28 = vector.broadcast %7 : vector<1x32xf32> to vector<8x32xf32>
    %29 = arith.addf %27, %28 : vector<8x32xf32>
    %30 = arith.truncf %29 : vector<8x32xf32> to vector<8x32xbf16>
    %c0_12 = arith.constant 0 : index
    %c0_13 = arith.constant 0 : index
    %c0_14 = arith.constant 0 : index
    %31 = vector.load %arg5[%c0_12, %c0_13, %c0_14] : memref<1x32x96xbf16, #tpu.memory_space<vmem>>, vector<1x32x96xbf16>
    %32 = vector.shape_cast %31 : vector<1x32x96xbf16> to vector<32x96xbf16>
    %cst_15 = arith.constant dense<0.000000e+00> : vector<8x96xf32>
    %33 = tpu.matmul %30, %32, %cst_15 {dimension_numbers = #tpu.dot_dimension_numbers<[1], [0], [0], [1], [0, 0, 1, 1], [], []>} : vector<8x32xbf16>, vector<32x96xbf16>, vector<8x96xf32> -> vector<8x96xf32>
    %c0_16 = arith.constant 0 : index
    %c0_17 = arith.constant 0 : index
    %c0_18 = arith.constant 0 : index
    %34 = vector.load %arg6[%c0_16, %c0_17, %c0_18] : memref<1x1x96xf32, #tpu.memory_space<vmem>>, vector<1x1x96xf32>
    %35 = vector.shape_cast %34 : vector<1x1x96xf32> to vector<1x96xf32>
    %36 = vector.broadcast %35 : vector<1x96xf32> to vector<8x96xf32>
    %37 = arith.addf %33, %36 : vector<8x96xf32>
    %38 = vector.extract_strided_slice %37 {offsets = [0, 32], sizes = [8, 64], strides = [1, 1]} : vector<8x96xf32> to vector<8x64xf32>
    %c0_19 = arith.constant 0 : index
    %c0_20 = arith.constant 0 : index
    %c0_21 = arith.constant 0 : index
    %39 = vector.load %arg18[%c0_19, %c0_20, %c0_21] : memref<1x8x64xf32, #tpu.memory_space<vmem>>, vector<1x8x64xf32>
    %40 = vector.shape_cast %39 : vector<1x8x64xf32> to vector<8x64xf32>
    %41 = vector.shape_cast %38 : vector<8x64xf32> to vector<1x8x64xf32>
    tpu.vector_store %arg18[%c0_19, %c0_20, %c0_21], %41 {strides = array<i32>} : memref<1x8x64xf32, #tpu.memory_space<vmem>>, vector<1x8x64xf32>,
    %42 = tpu.iota {dimensions = array<i32: 0>} : vector<8x8xi32>
    %43 = tpu.iota {dimensions = array<i32: 1>} : vector<8x8xi32>
    %44 = arith.cmpi sge, %42, %43 : vector<8x8xi32>
    %45 = vector.extract_strided_slice %37 {offsets = [0, 0], sizes = [8, 8], strides = [1, 1]} : vector<8x96xf32> to vector<8x8xf32>
    %cst_22 = arith.constant 0.353553385 : f32
    %46 = vector.broadcast %cst_22 : f32 to vector<8x8xf32>
    %47 = arith.mulf %45, %46 : vector<8x8xf32>
    %48 = arith.truncf %47 : vector<8x8xf32> to vector<8x8xbf16>
    %49 = vector.extract_strided_slice %37 {offsets = [0, 32], sizes = [8, 8], strides = [1, 1]} : vector<8x96xf32> to vector<8x8xf32>
    %50 = arith.truncf %49 : vector<8x8xf32> to vector<8x8xbf16>
    %51 = vector.extract_strided_slice %37 {offsets = [0, 64], sizes = [8, 8], strides = [1, 1]} : vector<8x96xf32> to vector<8x8xf32>
    %52 = arith.truncf %51 : vector<8x8xf32> to vector<8x8xbf16>
    %cst_23 = arith.constant dense<0.000000e+00> : vector<8x8xf32>
    %53 = tpu.matmul %48, %50, %cst_23 {dimension_numbers = #tpu.dot_dimension_numbers<[1], [1], [0], [0], [0, 0, 1, 0], [], []>} : vector<8x8xbf16>, vector<8x8xbf16>, vector<8x8xf32> -> vector<8x8xf32>
    %cst_24 = arith.constant -1.000000e+10 : f32
    %54 = vector.broadcast %cst_24 : f32 to vector<8x8xf32>
    %55 = arith.select %44, %53, %54 : vector<8x8xi1>, vector<8x8xf32>
    %cst_25 = arith.constant dense<0xFF800000> : vector<8xf32>
    %56 = vector.multi_reduction <maximumf>, %55, %cst_25 [1] : vector<8x8xf32> to vector<8xf32>
    %57 = vector.shape_cast %56 : vector<8xf32> to vector<8x1xf32>
    %58 = vector.broadcast %57 : vector<8x1xf32> to vector<8x8xf32>
    %59 = arith.subf %55, %58 : vector<8x8xf32>
    %60 = math.exp %59 : vector<8x8xf32>
    %cst_26 = arith.constant dense<0.000000e+00> : vector<8xf32>
    %61 = vector.multi_reduction <add>, %60, %cst_26 [1] : vector<8x8xf32> to vector<8xf32>
    %62 = vector.shape_cast %61 : vector<8xf32> to vector<8x1xf32>
    %63 = tpu.reciprocal %62 {approx = true} : vector<8x1xf32> -> vector<8x1xf32>
    %64 = vector.broadcast %63 : vector<8x1xf32> to vector<8x8xf32>
    %65 = arith.mulf %60, %64 : vector<8x8xf32>
    %66 = arith.truncf %65 : vector<8x8xf32> to vector<8x8xbf16>
    %cst_27 = arith.constant dense<0.000000e+00> : vector<8x8xf32>
    %67 = tpu.matmul %66, %52, %cst_27 {dimension_numbers = #tpu.dot_dimension_numbers<[1], [0], [0], [1], [0, 0, 1, 1], [], []>} : vector<8x8xbf16>, vector<8x8xbf16>, vector<8x8xf32> -> vector<8x8xf32>
    %c0_28 = arith.constant 0 : index
    %c0_29 = arith.constant 0 : index
    %68 = vector.load %arg19[%c0_28, %c0_29] : memref<8x32xf32, #tpu.memory_space<vmem>>, vector<8x8xf32>
    tpu.vector_store %arg19[%c0_28, %c0_29], %67 {strides = array<i32>} : memref<8x32xf32, #tpu.memory_space<vmem>>, vector<8x8xf32>,
    %69 = vector.extract_strided_slice %37 {offsets = [0, 8], sizes = [8, 8], strides = [1, 1]} : vector<8x96xf32> to vector<8x8xf32>
    %cst_30 = arith.constant 0.353553385 : f32
    %70 = vector.broadcast %cst_30 : f32 to vector<8x8xf32>
    %71 = arith.mulf %69, %70 : vector<8x8xf32>
    %72 = arith.truncf %71 : vector<8x8xf32> to vector<8x8xbf16>
    %73 = vector.extract_strided_slice %37 {offsets = [0, 40], sizes = [8, 8], strides = [1, 1]} : vector<8x96xf32> to vector<8x8xf32>
    %74 = arith.truncf %73 : vector<8x8xf32> to vector<8x8xbf16>
    %75 = vector.extract_strided_slice %37 {offsets = [0, 72], sizes = [8, 8], strides = [1, 1]} : vector<8x96xf32> to vector<8x8xf32>
    %76 = arith.truncf %75 : vector<8x8xf32> to vector<8x8xbf16>
    %cst_31 = arith.constant dense<0.000000e+00> : vector<8x8xf32>
    %77 = tpu.matmul %72, %74, %cst_31 {dimension_numbers = #tpu.dot_dimension_numbers<[1], [1], [0], [0], [0, 0, 1, 0], [], []>} : vector<8x8xbf16>, vector<8x8xbf16>, vector<8x8xf32> -> vector<8x8xf32>
    %cst_32 = arith.constant -1.000000e+10 : f32
    %78 = vector.broadcast %cst_32 : f32 to vector<8x8xf32>
    %79 = arith.select %44, %77, %78 : vector<8x8xi1>, vector<8x8xf32>
    %cst_33 = arith.constant dense<0xFF800000> : vector<8xf32>
    %80 = vector.multi_reduction <maximumf>, %79, %cst_33 [1] : vector<8x8xf32> to vector<8xf32>
    %81 = vector.shape_cast %80 : vector<8xf32> to vector<8x1xf32>
    %82 = vector.broadcast %81 : vector<8x1xf32> to vector<8x8xf32>
    %83 = arith.subf %79, %82 : vector<8x8xf32>
    %84 = math.exp %83 : vector<8x8xf32>
    %cst_34 = arith.constant dense<0.000000e+00> : vector<8xf32>
    %85 = vector.multi_reduction <add>, %84, %cst_34 [1] : vector<8x8xf32> to vector<8xf32>
    %86 = vector.shape_cast %85 : vector<8xf32> to vector<8x1xf32>
    %87 = tpu.reciprocal %86 {approx = true} : vector<8x1xf32> -> vector<8x1xf32>
    %88 = vector.broadcast %87 : vector<8x1xf32> to vector<8x8xf32>
    %89 = arith.mulf %84, %88 : vector<8x8xf32>
    %90 = arith.truncf %89 : vector<8x8xf32> to vector<8x8xbf16>
    %cst_35 = arith.constant dense<0.000000e+00> : vector<8x8xf32>
    %91 = tpu.matmul %90, %76, %cst_35 {dimension_numbers = #tpu.dot_dimension_numbers<[1], [0], [0], [1], [0, 0, 1, 1], [], []>} : vector<8x8xbf16>, vector<8x8xbf16>, vector<8x8xf32> -> vector<8x8xf32>
    %c0_36 = arith.constant 0 : index
    %c8 = arith.constant 8 : index
    %92 = vector.load %arg19[%c0_36, %c8] : memref<8x32xf32, #tpu.memory_space<vmem>>, vector<8x8xf32>
    tpu.vector_store %arg19[%c0_36, %c8], %91 {strides = array<i32>} : memref<8x32xf32, #tpu.memory_space<vmem>>, vector<8x8xf32>,
    %93 = vector.extract_strided_slice %37 {offsets = [0, 16], sizes = [8, 8], strides = [1, 1]} : vector<8x96xf32> to vector<8x8xf32>
    %cst_37 = arith.constant 0.353553385 : f32
    %94 = vector.broadcast %cst_37 : f32 to vector<8x8xf32>
    %95 = arith.mulf %93, %94 : vector<8x8xf32>
    %96 = arith.truncf %95 : vector<8x8xf32> to vector<8x8xbf16>
    %97 = vector.extract_strided_slice %37 {offsets = [0, 48], sizes = [8, 8], strides = [1, 1]} : vector<8x96xf32> to vector<8x8xf32>
    %98 = arith.truncf %97 : vector<8x8xf32> to vector<8x8xbf16>
    %99 = vector.extract_strided_slice %37 {offsets = [0, 80], sizes = [8, 8], strides = [1, 1]} : vector<8x96xf32> to vector<8x8xf32>
    %100 = arith.truncf %99 : vector<8x8xf32> to vector<8x8xbf16>
    %cst_38 = arith.constant dense<0.000000e+00> : vector<8x8xf32>
    %101 = tpu.matmul %96, %98, %cst_38 {dimension_numbers = #tpu.dot_dimension_numbers<[1], [1], [0], [0], [0, 0, 1, 0], [], []>} : vector<8x8xbf16>, vector<8x8xbf16>, vector<8x8xf32> -> vector<8x8xf32>
    %cst_39 = arith.constant -1.000000e+10 : f32
    %102 = vector.broadcast %cst_39 : f32 to vector<8x8xf32>
    %103 = arith.select %44, %101, %102 : vector<8x8xi1>, vector<8x8xf32>
    %cst_40 = arith.constant dense<0xFF800000> : vector<8xf32>
    %104 = vector.multi_reduction <maximumf>, %103, %cst_40 [1] : vector<8x8xf32> to vector<8xf32>
    %105 = vector.shape_cast %104 : vector<8xf32> to vector<8x1xf32>
    %106 = vector.broadcast %105 : vector<8x1xf32> to vector<8x8xf32>
    %107 = arith.subf %103, %106 : vector<8x8xf32>
    %108 = math.exp %107 : vector<8x8xf32>
    %cst_41 = arith.constant dense<0.000000e+00> : vector<8xf32>
    %109 = vector.multi_reduction <add>, %108, %cst_41 [1] : vector<8x8xf32> to vector<8xf32>
    %110 = vector.shape_cast %109 : vector<8xf32> to vector<8x1xf32>
    %111 = tpu.reciprocal %110 {approx = true} : vector<8x1xf32> -> vector<8x1xf32>
    %112 = vector.broadcast %111 : vector<8x1xf32> to vector<8x8xf32>
    %113 = arith.mulf %108, %112 : vector<8x8xf32>
    %114 = arith.truncf %113 : vector<8x8xf32> to vector<8x8xbf16>
    %cst_42 = arith.constant dense<0.000000e+00> : vector<8x8xf32>
    %115 = tpu.matmul %114, %100, %cst_42 {dimension_numbers = #tpu.dot_dimension_numbers<[1], [0], [0], [1], [0, 0, 1, 1], [], []>} : vector<8x8xbf16>, vector<8x8xbf16>, vector<8x8xf32> -> vector<8x8xf32>
    %c0_43 = arith.constant 0 : index
    %c16 = arith.constant 16 : index
    %116 = vector.load %arg19[%c0_43, %c16] : memref<8x32xf32, #tpu.memory_space<vmem>>, vector<8x8xf32>
    tpu.vector_store %arg19[%c0_43, %c16], %115 {strides = array<i32>} : memref<8x32xf32, #tpu.memory_space<vmem>>, vector<8x8xf32>,
    %117 = vector.extract_strided_slice %37 {offsets = [0, 24], sizes = [8, 8], strides = [1, 1]} : vector<8x96xf32> to vector<8x8xf32>
    %cst_44 = arith.constant 0.353553385 : f32
    %118 = vector.broadcast %cst_44 : f32 to vector<8x8xf32>
    %119 = arith.mulf %117, %118 : vector<8x8xf32>
    %120 = arith.truncf %119 : vector<8x8xf32> to vector<8x8xbf16>
    %121 = vector.extract_strided_slice %37 {offsets = [0, 56], sizes = [8, 8], strides = [1, 1]} : vector<8x96xf32> to vector<8x8xf32>
    %122 = arith.truncf %121 : vector<8x8xf32> to vector<8x8xbf16>
    %123 = vector.extract_strided_slice %37 {offsets = [0, 88], sizes = [8, 8], strides = [1, 1]} : vector<8x96xf32> to vector<8x8xf32>
    %124 = arith.truncf %123 : vector<8x8xf32> to vector<8x8xbf16>
    %cst_45 = arith.constant dense<0.000000e+00> : vector<8x8xf32>
    %125 = tpu.matmul %120, %122, %cst_45 {dimension_numbers = #tpu.dot_dimension_numbers<[1], [1], [0], [0], [0, 0, 1, 0], [], []>} : vector<8x8xbf16>, vector<8x8xbf16>, vector<8x8xf32> -> vector<8x8xf32>
    %cst_46 = arith.constant -1.000000e+10 : f32
    %126 = vector.broadcast %cst_46 : f32 to vector<8x8xf32>
    %127 = arith.select %44, %125, %126 : vector<8x8xi1>, vector<8x8xf32>
    %cst_47 = arith.constant dense<0xFF800000> : vector<8xf32>
    %128 = vector.multi_reduction <maximumf>, %127, %cst_47 [1] : vector<8x8xf32> to vector<8xf32>
    %129 = vector.shape_cast %128 : vector<8xf32> to vector<8x1xf32>
    %130 = vector.broadcast %129 : vector<8x1xf32> to vector<8x8xf32>
    %131 = arith.subf %127, %130 : vector<8x8xf32>
    %132 = math.exp %131 : vector<8x8xf32>
    %cst_48 = arith.constant dense<0.000000e+00> : vector<8xf32>
    %133 = vector.multi_reduction <add>, %132, %cst_48 [1] : vector<8x8xf32> to vector<8xf32>
    %134 = vector.shape_cast %133 : vector<8xf32> to vector<8x1xf32>
    %135 = tpu.reciprocal %134 {approx = true} : vector<8x1xf32> -> vector<8x1xf32>
    %136 = vector.broadcast %135 : vector<8x1xf32> to vector<8x8xf32>
    %137 = arith.mulf %132, %136 : vector<8x8xf32>
    %138 = arith.truncf %137 : vector<8x8xf32> to vector<8x8xbf16>
    %cst_49 = arith.constant dense<0.000000e+00> : vector<8x8xf32>
    %139 = tpu.matmul %138, %124, %cst_49 {dimension_numbers = #tpu.dot_dimension_numbers<[1], [0], [0], [1], [0, 0, 1, 1], [], []>} : vector<8x8xbf16>, vector<8x8xbf16>, vector<8x8xf32> -> vector<8x8xf32>
    %c0_50 = arith.constant 0 : index
    %c24 = arith.constant 24 : index
    %140 = vector.load %arg19[%c0_50, %c24] : memref<8x32xf32, #tpu.memory_space<vmem>>, vector<8x8xf32>
    tpu.vector_store %arg19[%c0_50, %c24], %139 {strides = array<i32>} : memref<8x32xf32, #tpu.memory_space<vmem>>, vector<8x8xf32>,
    %c0_51 = arith.constant 0 : index
    %c0_52 = arith.constant 0 : index
    %141 = vector.load %arg19[%c0_51, %c0_52] : memref<8x32xf32, #tpu.memory_space<vmem>>, vector<8x32xf32>
    %142 = arith.truncf %141 : vector<8x32xf32> to vector<8x32xbf16>
    %c0_53 = arith.constant 0 : index
    %c0_54 = arith.constant 0 : index
    %c0_55 = arith.constant 0 : index
    %143 = vector.load %arg7[%c0_53, %c0_54, %c0_55] : memref<1x32x32xbf16, #tpu.memory_space<vmem>>, vector<1x32x32xbf16>
    %144 = vector.shape_cast %143 : vector<1x32x32xbf16> to vector<32x32xbf16>
    %cst_56 = arith.constant dense<0.000000e+00> : vector<8x32xf32>
    %145 = tpu.matmul %142, %144, %cst_56 {dimension_numbers = #tpu.dot_dimension_numbers<[1], [0], [0], [1], [0, 0, 1, 1], [], []>} : vector<8x32xbf16>, vector<32x32xbf16>, vector<8x32xf32> -> vector<8x32xf32>
    %c0_57 = arith.constant 0 : index
    %c0_58 = arith.constant 0 : index
    %c0_59 = arith.constant 0 : index
    %146 = vector.load %arg8[%c0_57, %c0_58, %c0_59] : memref<1x1x32xf32, #tpu.memory_space<vmem>>, vector<1x1x32xf32>
    %147 = vector.shape_cast %146 : vector<1x1x32xf32> to vector<1x32xf32>
    %148 = vector.broadcast %147 : vector<1x32xf32> to vector<8x32xf32>
    %149 = arith.addf %145, %148 : vector<8x32xf32>
    %150 = arith.addf %3, %149 : vector<8x32xf32>
    %c0_60 = arith.constant 0 : index
    %c0_61 = arith.constant 0 : index
    %c0_62 = arith.constant 0 : index
    %151 = vector.load %arg9[%c0_60, %c0_61, %c0_62] : memref<1x1x32xf32, #tpu.memory_space<vmem>>, vector<1x1x32xf32>
    %152 = vector.shape_cast %151 : vector<1x1x32xf32> to vector<1x32xf32>
    %c0_63 = arith.constant 0 : index
    %c0_64 = arith.constant 0 : index
    %c0_65 = arith.constant 0 : index
    %153 = vector.load %arg10[%c0_63, %c0_64, %c0_65] : memref<1x1x32xf32, #tpu.memory_space<vmem>>, vector<1x1x32xf32>
    %154 = vector.shape_cast %153 : vector<1x1x32xf32> to vector<1x32xf32>
    %cst_66 = arith.constant dense<0.000000e+00> : vector<8xf32>
    %155 = vector.multi_reduction <add>, %150, %cst_66 [1] : vector<8x32xf32> to vector<8xf32>
    %156 = vector.shape_cast %155 : vector<8xf32> to vector<8x1xf32>
    %cst_67 = arith.constant 3.200000e+01 : f32
    %157 = vector.broadcast %cst_67 : f32 to vector<8x1xf32>
    %158 = arith.divf %156, %157 : vector<8x1xf32>
    %159 = vector.broadcast %158 : vector<8x1xf32> to vector<8x32xf32>
    %160 = arith.subf %150, %159 : vector<8x32xf32>
    %161 = arith.mulf %160, %160 : vector<8x32xf32>
    %cst_68 = arith.constant dense<0.000000e+00> : vector<8xf32>
    %162 = vector.multi_reduction <add>, %161, %cst_68 [1] : vector<8x32xf32> to vector<8xf32>
    %163 = vector.shape_cast %162 : vector<8xf32> to vector<8x1xf32>
    %cst_69 = arith.constant 3.200000e+01 : f32
    %164 = vector.broadcast %cst_69 : f32 to vector<8x1xf32>
    %165 = arith.divf %163, %164 : vector<8x1xf32>
    %166 = vector.broadcast %158 : vector<8x1xf32> to vector<8x32xf32>
    %167 = arith.subf %150, %166 : vector<8x32xf32>
    %cst_70 = arith.constant 9.99999974E-6 : f32
    %168 = vector.broadcast %cst_70 : f32 to vector<8x1xf32>
    %169 = arith.addf %165, %168 : vector<8x1xf32>
    %170 = math.sqrt %169 : vector<8x1xf32>
    %171 = vector.broadcast %170 : vector<8x1xf32> to vector<8x32xf32>
    %172 = arith.divf %167, %171 : vector<8x32xf32>
    %173 = vector.broadcast %152 : vector<1x32xf32> to vector<8x32xf32>
    %174 = arith.mulf %172, %173 : vector<8x32xf32>
    %175 = vector.broadcast %154 : vector<1x32xf32> to vector<8x32xf32>
    %176 = arith.addf %174, %175 : vector<8x32xf32>
    %177 = arith.truncf %176 : vector<8x32xf32> to vector<8x32xbf16>
    %c0_71 = arith.constant 0 : index
    %c0_72 = arith.constant 0 : index
    %c0_73 = arith.constant 0 : index
    %178 = vector.load %arg11[%c0_71, %c0_72, %c0_73] : memref<1x32x128xbf16, #tpu.memory_space<vmem>>, vector<1x32x128xbf16>
    %179 = vector.shape_cast %178 : vector<1x32x128xbf16> to vector<32x128xbf16>
    %cst_74 = arith.constant dense<0.000000e+00> : vector<8x128xf32>
    %180 = tpu.matmul %177, %179, %cst_74 {dimension_numbers = #tpu.dot_dimension_numbers<[1], [0], [0], [1], [0, 0, 1, 1], [], []>} : vector<8x32xbf16>, vector<32x128xbf16>, vector<8x128xf32> -> vector<8x128xf32>
    %c0_75 = arith.constant 0 : index
    %c0_76 = arith.constant 0 : index
    %c0_77 = arith.constant 0 : index
    %181 = vector.load %arg12[%c0_75, %c0_76, %c0_77] : memref<1x1x128xf32, #tpu.memory_space<vmem>>, vector<1x1x128xf32>
    %182 = vector.shape_cast %181 : vector<1x1x128xf32> to vector<1x128xf32>
    %183 = vector.broadcast %182 : vector<1x128xf32> to vector<8x128xf32>
    %184 = arith.addf %180, %183 : vector<8x128xf32>
    %cst_78 = arith.constant 5.000000e-01 : f32
    %185 = vector.broadcast %cst_78 : f32 to vector<8x128xf32>
    %186 = arith.mulf %185, %184 : vector<8x128xf32>
    %cst_79 = arith.constant 4.471500e-02 : f32
    %187 = vector.broadcast %cst_79 : f32 to vector<8x128xf32>
    %188 = arith.mulf %187, %184 : vector<8x128xf32>
    %189 = arith.mulf %188, %184 : vector<8x128xf32>
    %190 = arith.mulf %189, %184 : vector<8x128xf32>
    %191 = arith.addf %184, %190 : vector<8x128xf32>
    %cst_80 = arith.constant 0.797884583 : f32
    %192 = vector.broadcast %cst_80 : f32 to vector<8x128xf32>
    %193 = arith.mulf %192, %191 : vector<8x128xf32>
    %194 = math.tanh %193 : vector<8x128xf32>
    %cst_81 = arith.constant 1.000000e+00 : f32
    %195 = vector.broadcast %cst_81 : f32 to vector<8x128xf32>
    %196 = arith.addf %195, %194 : vector<8x128xf32>
    %197 = arith.mulf %186, %196 : vector<8x128xf32>
    %198 = arith.truncf %197 : vector<8x128xf32> to vector<8x128xbf16>
    %c0_82 = arith.constant 0 : index
    %c0_83 = arith.constant 0 : index
    %c0_84 = arith.constant 0 : index
    %199 = vector.load %arg13[%c0_82, %c0_83, %c0_84] : memref<1x128x32xbf16, #tpu.memory_space<vmem>>, vector<1x128x32xbf16>
    %200 = vector.shape_cast %199 : vector<1x128x32xbf16> to vector<128x32xbf16>
    %cst_85 = arith.constant dense<0.000000e+00> : vector<8x32xf32>
    %201 = tpu.matmul %198, %200, %cst_85 {dimension_numbers = #tpu.dot_dimension_numbers<[1], [0], [0], [1], [0, 0, 1, 1], [], []>} : vector<8x128xbf16>, vector<128x32xbf16>, vector<8x32xf32> -> vector<8x32xf32>
    %c0_86 = arith.constant 0 : index
    %c0_87 = arith.constant 0 : index
    %c0_88 = arith.constant 0 : index
    %202 = vector.load %arg14[%c0_86, %c0_87, %c0_88] : memref<1x1x32xf32, #tpu.memory_space<vmem>>, vector<1x1x32xf32>
    %203 = vector.shape_cast %202 : vector<1x1x32xf32> to vector<1x32xf32>
    %204 = vector.broadcast %203 : vector<1x32xf32> to vector<8x32xf32>
    %205 = arith.addf %201, %204 : vector<8x32xf32>
    %206 = arith.addf %150, %205 : vector<8x32xf32>
    %c1_i32 = arith.constant 1 : i32
    %207 = arith.cmpi eq, %arg1, %c1_i32 : i32
    %208 = arith.extui %207 : i1 to i32
    %c0_i32_89 = arith.constant 0 : i32
    %209 = arith.cmpi ne, %208, %c0_i32_89 : i32
    scf.if %209 {
      %c0_92 = arith.constant 0 : index
      %c0_93 = arith.constant 0 : index
      %213 = vector.load %arg15[%c0_92, %c0_93] : memref<1x32xf32, #tpu.memory_space<vmem>>, vector<1x32xf32>
      %c0_94 = arith.constant 0 : index
      %c0_95 = arith.constant 0 : index
      %214 = vector.load %arg16[%c0_94, %c0_95] : memref<1x32xf32, #tpu.memory_space<vmem>>, vector<1x32xf32>
      %cst_96 = arith.constant dense<0.000000e+00> : vector<8xf32>
      %215 = vector.multi_reduction <add>, %206, %cst_96 [1] : vector<8x32xf32> to vector<8xf32>
      %216 = vector.shape_cast %215 : vector<8xf32> to vector<8x1xf32>
      %cst_97 = arith.constant 3.200000e+01 : f32
      %217 = vector.broadcast %cst_97 : f32 to vector<8x1xf32>
      %218 = arith.divf %216, %217 : vector<8x1xf32>
      %219 = vector.broadcast %218 : vector<8x1xf32> to vector<8x32xf32>
      %220 = arith.subf %206, %219 : vector<8x32xf32>
      %221 = arith.mulf %220, %220 : vector<8x32xf32>
      %cst_98 = arith.constant dense<0.000000e+00> : vector<8xf32>
      %222 = vector.multi_reduction <add>, %221, %cst_98 [1] : vector<8x32xf32> to vector<8xf32>
      %223 = vector.shape_cast %222 : vector<8xf32> to vector<8x1xf32>
      %cst_99 = arith.constant 3.200000e+01 : f32
      %224 = vector.broadcast %cst_99 : f32 to vector<8x1xf32>
      %225 = arith.divf %223, %224 : vector<8x1xf32>
      %226 = vector.broadcast %218 : vector<8x1xf32> to vector<8x32xf32>
      %227 = arith.subf %206, %226 : vector<8x32xf32>
      %cst_100 = arith.constant 9.99999974E-6 : f32
      %228 = vector.broadcast %cst_100 : f32 to vector<8x1xf32>
      %229 = arith.addf %225, %228 : vector<8x1xf32>
      %230 = math.sqrt %229 : vector<8x1xf32>
      %231 = vector.broadcast %230 : vector<8x1xf32> to vector<8x32xf32>
      %232 = arith.divf %227, %231 : vector<8x32xf32>
      %233 = vector.broadcast %213 : vector<1x32xf32> to vector<8x32xf32>
      %234 = arith.mulf %232, %233 : vector<8x32xf32>
      %235 = vector.broadcast %214 : vector<1x32xf32> to vector<8x32xf32>
      %236 = arith.addf %234, %235 : vector<8x32xf32>
      %c0_101 = arith.constant 0 : index
      %c0_102 = arith.constant 0 : index
      %237 = vector.load %arg17[%c0_101, %c0_102] : memref<8x32xf32, #tpu.memory_space<vmem>>, vector<8x32xf32>
      tpu.vector_store %arg17[%c0_101, %c0_102], %236 {strides = array<i32>} : memref<8x32xf32, #tpu.memory_space<vmem>>, vector<8x32xf32>,
    } else {
    }
    %c1_i32_90 = arith.constant 1 : i32
    %210 = arith.cmpi slt, %arg1, %c1_i32_90 : i32
    %211 = arith.extui %210 : i1 to i32
    %c0_i32_91 = arith.constant 0 : i32
    %212 = arith.cmpi ne, %211, %c0_i32_91 : i32
    scf.if %212 {
      %c0_92 = arith.constant 0 : index
      %c0_93 = arith.constant 0 : index
      %213 = vector.load %arg17[%c0_92, %c0_93] : memref<8x32xf32, #tpu.memory_space<vmem>>, vector<8x32xf32>
      tpu.vector_store %arg17[%c0_92, %c0_93], %206 {strides = array<i32>} : memref<8x32xf32, #tpu.memory_space<vmem>>, vector<8x32xf32>,
    } else {
    }
    return
  }
  func.func @transform_0(%arg0: i32, %arg1: i32) -> (i32, i32) {
    %c0_i32 = arith.constant 0 : i32
    %c0_i32_0 = arith.constant 0 : i32
    return %arg0, %c0_i32 : i32, i32
  }
  func.func @transform_1(%arg0: i32, %arg1: i32) -> (i32, i32, i32) {
    %c0_i32 = arith.constant 0 : i32
    %c0_i32_0 = arith.constant 0 : i32
    %c0_i32_1 = arith.constant 0 : i32
    return %arg1, %c0_i32, %c0_i32_0 : i32, i32, i32
  }
  func.func @transform_2(%arg0: i32, %arg1: i32) -> (i32, i32, i32) {
    %c0_i32 = arith.constant 0 : i32
    %c0_i32_0 = arith.constant 0 : i32
    %c0_i32_1 = arith.constant 0 : i32
    return %arg1, %c0_i32, %c0_i32_0 : i32, i32, i32
  }
  func.func @transform_3(%arg0: i32, %arg1: i32) -> (i32, i32, i32) {
    %c0_i32 = arith.constant 0 : i32
    %c0_i32_0 = arith.constant 0 : i32
    %c0_i32_1 = arith.constant 0 : i32
    return %arg1, %c0_i32, %c0_i32_0 : i32, i32, i32
  }
  func.func @transform_4(%arg0: i32, %arg1: i32) -> (i32, i32, i32) {
    %c0_i32 = arith.constant 0 : i32
    %c0_i32_0 = arith.constant 0 : i32
    %c0_i32_1 = arith.constant 0 : i32
    return %arg1, %c0_i32, %c0_i32_0 : i32, i32, i32
  }
  func.func @transform_5(%arg0: i32, %arg1: i32) -> (i32, i32, i32) {
    %c0_i32 = arith.constant 0 : i32
    %c0_i32_0 = arith.constant 0 : i32
    %c0_i32_1 = arith.constant 0 : i32
    return %arg1, %c0_i32, %c0_i32_0 : i32, i32, i32
  }
  func.func @transform_6(%arg0: i32, %arg1: i32) -> (i32, i32, i32) {
    %c0_i32 = arith.constant 0 : i32
    %c0_i32_0 = arith.constant 0 : i32
    %c0_i32_1 = arith.constant 0 : i32
    return %arg1, %c0_i32, %c0_i32_0 : i32, i32, i32
  }
  func.func @transform_7(%arg0: i32, %arg1: i32) -> (i32, i32, i32) {
    %c0_i32 = arith.constant 0 : i32
    %c0_i32_0 = arith.constant 0 : i32
    %c0_i32_1 = arith.constant 0 : i32
    return %arg1, %c0_i32, %c0_i32_0 : i32, i32, i32
  }
  func.func @transform_8(%arg0: i32, %arg1: i32) -> (i32, i32, i32) {
    %c0_i32 = arith.constant 0 : i32
    %c0_i32_0 = arith.constant 0 : i32
    %c0_i32_1 = arith.constant 0 : i32
    return %arg1, %c0_i32, %c0_i32_0 : i32, i32, i32
  }
  func.func @transform_9(%arg0: i32, %arg1: i32) -> (i32, i32, i32) {
    %c0_i32 = arith.constant 0 : i32
    %c0_i32_0 = arith.constant 0 : i32
    %c0_i32_1 = arith.constant 0 : i32
    return %arg1, %c0_i32, %c0_i32_0 : i32, i32, i32
  }
  func.func @transform_10(%arg0: i32, %arg1: i32) -> (i32, i32, i32) {
    %c0_i32 = arith.constant 0 : i32
    %c0_i32_0 = arith.constant 0 : i32
    %c0_i32_1 = arith.constant 0 : i32
    return %arg1, %c0_i32, %c0_i32_0 : i32, i32, i32
  }
  func.func @transform_11(%arg0: i32, %arg1: i32) -> (i32, i32, i32) {
    %c0_i32 = arith.constant 0 : i32
    %c0_i32_0 = arith.constant 0 : i32
    %c0_i32_1 = arith.constant 0 : i32
    return %arg1, %c0_i32, %c0_i32_0 : i32, i32, i32
  }
  func.func @transform_12(%arg0: i32, %arg1: i32) -> (i32, i32, i32) {
    %c0_i32 = arith.constant 0 : i32
    %c0_i32_0 = arith.constant 0 : i32
    %c0_i32_1 = arith.constant 0 : i32
    return %arg1, %c0_i32, %c0_i32_0 : i32, i32, i32
  }
  func.func @transform_13(%arg0: i32, %arg1: i32) -> (i32, i32) {
    %c0_i32 = arith.constant 0 : i32
    %c0_i32_0 = arith.constant 0 : i32
    %c0_i32_1 = arith.constant 0 : i32
    return %c0_i32, %c0_i32_0 : i32, i32
  }
  func.func @transform_14(%arg0: i32, %arg1: i32) -> (i32, i32) {
    %c0_i32 = arith.constant 0 : i32
    %c0_i32_0 = arith.constant 0 : i32
    %c0_i32_1 = arith.constant 0 : i32
    return %c0_i32, %c0_i32_0 : i32, i32
  }
  func.func @transform_15(%arg0: i32, %arg1: i32) -> (i32, i32) {
    %c0_i32 = arith.constant 0 : i32
    %c0_i32_0 = arith.constant 0 : i32
    return %arg0, %c0_i32 : i32, i32
  }
  func.func @transform_16(%arg0: i32, %arg1: i32) -> (i32, i32, i32) {
    %c0_i32 = arith.constant 0 : i32
    %c0_i32_0 = arith.constant 0 : i32
    return %arg1, %arg0, %c0_i32 : i32, i32, i32
  }
}

</mosaic_0001>

<bundles_post_ra>
// kernel: tpu_custom_call.1
= control target key start
LH: loop header
LB: loop body
LE: loop exit
PB: predicated region body
PF: predicated region fallthrough
CT: control target
= control target key end

     0   :  { %s2982_s0 = inlined_call_operand.vmem [shape: f32[16,32], index: 0, kind: input, shape index: {}]   ;;  %s2983_s1 = inlined_call_operand.vmem [shape: f32[2,1,32], index: 1, kind: input, shape index: {}]   ;;  %s2984_s2 = inlined_call_operand.vmem [shape: f32[2,1,32], index: 2, kind: input, shape index: {}]   ;;  %s2985_s3 = inlined_call_operand.vmem [shape: bf16[2,32,96], index: 3, kind: input, shape index: {}]   ;;  %s2986_s4 = inlined_call_operand.vmem [shape: f32[2,1,96], index: 4, kind: input, shape index: {}]   ;;  %s2987_s5 = inlined_call_operand.vmem [shape: bf16[2,32,32], index: 5, kind: input, shape index: {}]   ;;  %s2988_s6 = inlined_call_operand.vmem [shape: f32[2,1,32], index: 6, kind: input, shape index: {}]   ;;  %s2989_s7 = inlined_call_operand.vmem [shape: f32[2,1,32], index: 7, kind: input, shape index: {}]   ;;  %s2990_s8 = inlined_call_operand.vmem [shape: f32[2,1,32], index: 8, kind: input, shape index: {}]   ;;  %s2991_s9 = inlined_call_operand.vmem [shape: bf16[2,32,128], index: 9, kind: input, shape index: {}]   ;;  %s2992_s10 = inlined_call_operand.vmem [shape: f32[2,1,128], index: 10, kind: input, shape index: {}]   ;;  %s2993_s11 = inlined_call_operand.vmem [shape: bf16[2,128,32], index: 11, kind: input, shape index: {}]   ;;  %s2994_s12 = inlined_call_operand.vmem [shape: f32[2,1,32], index: 12, kind: input, shape index: {}]   ;;  %s2995_s13 = inlined_call_operand.vmem [shape: f32[1,32], index: 13, kind: input, shape index: {}]   ;;  %s2996_s14 = inlined_call_operand.vmem [shape: f32[1,32], index: 14, kind: input, shape index: {}]   ;;  %s2997_s15 = inlined_call_operand.hbm [shape: f32[16,32], index: 15, kind: output, shape index: {0}]   ;;  %s2998_s16 = inlined_call_operand.hbm [shape: f32[2,16,64], index: 16, kind: output, shape index: {1}]  }
   0x1   :  { %3024 = sst [smem:[#allocation28_spill]] %s2982_s0 }
   0x2   :  { %3025 = sst [smem:[#allocation29_spill]] %s2985_s3 }
   0x3   :  { %3026 = sst [smem:[#allocation30_spill]] %s2987_s5 }
   0x4   :  { %3027 = sst [smem:[#allocation31_spill]] %s2988_s6 }
   0x5   :  { %3028 = sst [smem:[#allocation32_spill]] %s2989_s7 }
   0x6   :  { %3029 = sst [smem:[#allocation33_spill]] %s2992_s10 }
   0x7   :  { %3030 = sst [smem:[#allocation34_spill]] %s2993_s11 }
   0x8   :  { %3031 = sst [smem:[#allocation35_spill]] %s2994_s12 }
   0x9   :  { %3032 = sst [smem:[#allocation36_spill]] %s2995_s13 }
   0xa   :  { %3033 = sst [smem:[#allocation37_spill]] %s2996_s14 }
   0xb   :  { %3034 = sst [smem:[#allocation38_spill]] %s2997_s15 }
   0xc   :  { %3035 = sst [smem:[#allocation39_spill]] %s2998_s16 }
   0xd   :  { %22 = vsyncpa [#allocation4], 0 }
   0xe   :  { %24 = vsyncpa [#allocation4 + $0x1], 0 }
   0xf   :  { %25 = vsyncpa [#allocation6], 0 }
  0x10   :  { %27 = vsyncpa [#allocation6 + $0x1], 0  ;;  %s2527_s21 = smov 0   ;;  %s2529_s22 = smov 0  }
  0x11   :  { %s2531_s23 = smov 0   ;;  %s2533_s24 = smov 0  }
  0x12   :  { %s2535_s25 = smov 0   ;;  %s2537_s26 = smov 0  }
  0x13   :  { %s2539_s27 = smov 0   ;;  %s2541_s28 = smov 0  }
  0x14   :  { %s2543_s29 = smov 0   ;;  %s2545_s30 = smov 0  }
  0x15   :  { %s2547_s0 = smov 0  }
  0x16 LB: > { %3036 = sst [smem:[#allocation9_spill]] %s2382_s21  ;;  %s1925_s17 = sadd.s32 4294967295, %s2422_s0   ;;  %s2422_s0 = sphi %s2547_s0, %s33_s0   ;;  %s2418_s30 = sphi %s2545_s30, %s3107_s30   ;;  %s2414_s29 = sphi %s2543_s29, %s3106_s29   ;;  %s2410_s28 = sphi %s2541_s28, %s3105_s28   ;;  %s2406_s27 = sphi %s2539_s27, %s3104_s27   ;;  %s2402_s26 = sphi %s2537_s26, %s3103_s26   ;;  %s2398_s25 = sphi %s2535_s25, %s3102_s25   ;;  %s2394_s24 = sphi %s2533_s24, %s3101_s24   ;;  %s2390_s23 = sphi %s2531_s23, %s3100_s23   ;;  %s2386_s22 = sphi %s2529_s22, %s3099_s22   ;;  %s2382_s21 = sphi %s2527_s21, %s3098_s21  }
  0x17   : > { %3037 = sst [smem:[#allocation10_spill]] %s2386_s22  ;;  %s1926_s18 = sadd.s32 4294967294, %s2422_s0  }
  0x18   : > { %3038 = sst [smem:[#allocation11_spill]] %s2390_s23  ;;  %s42_s19 = sadd.s32 1, %s2414_s29 }
  0x19   : > { %3039 = sst [smem:[#allocation12_spill]] %s2394_s24  ;;  %s45_s20 = sadd.s32 1, %s2418_s30 }
  0x1a   : > { %3040 = sst [smem:[#allocation13_spill]] %s2398_s25  ;;  %p43_p0 = scmp.ge.s32.totalorder %s42_s19, 2 }
  0x1b   : > { %3041 = sst [smem:[#allocation14_spill]] %s2402_s26  ;;  %s432_s16 = sadd.s32 1, %s2402_s26 }
  0x1c   : > { %3042 = sst [smem:[#allocation15_spill]] %s2410_s28  ;;  %p442_p1 = scmp.ne.s32.totalorder %s2402_s26, %s2398_s25 }
  0x1d   : > { %3043 = sst [smem:[#allocation16_spill]] %s2414_s29  ;;  %p2589_p2 = scmp.eq.s32.totalorder %s1925_s17, 3 }
  0x1e   : > { %3044 = sst [smem:[#allocation17_spill]] %s2418_s30  ;;  %s3109_s19 = smov (%p43_p0, %s42_s19), 0 }
  0x1f   : > { %3045 = sst [smem:[#allocation18_spill]] %s2422_s0  ;;  %s3111_s20 = smov (!%p43_p0, %s45_s20), %s2418_s30 }
  0x20   : > { %3047 = sst [smem:[#allocation19_spill]] %s3109_s19  ;;  %p2598_p3 = por %p2589_p2, %p442_p1 }
  0x21   : > { %p448_p4 = scmp.ne.s32.totalorder %s2398_s25, %s2394_s24  ;;  %p47_p5 = scmp.ge.s32.totalorder %s3111_s20, 2 }
  0x22   : > { %s3048_s14 = scalar_select %p2598_p3, 1, 0 }
  0x23   : > { %p2604_p6 = scmp.eq.s32.totalorder %s1926_s18, 3  ;;  %s455_s13 = ssub.s32 %s2414_s29, %s3109_s19 }
  0x24   : > { %3049 = sst [smem:[#allocation20_spill]] %s3048_s14  ;;  %s460_s11 = sadd.s32 1, %s2390_s23 }
  0x25   : > { %s3113_s20 = smov (%p47_p5, %s3111_s20), 0  ;;  %p2615_p7 = por %p2604_p6, %p448_p4 }
  0x26   : > { %3051 = sst [smem:[#allocation21_spill]] %s3113_s20  ;;  %p470_p8 = scmp.ne.s32.totalorder %s2390_s23, %s2386_s22 }
  0x27   : > { %s3052_s12 = scalar_select %p2615_p7, 1, 0 }
  0x28   : > { %s429_s24 = ssub.s32 %s2418_s30, %s3113_s20  ;;  %p476_p9 = scmp.ne.s32.totalorder %s2386_s22, %s2382_s21 }
  0x29   : > { %3053 = sst [smem:[#allocation22_spill]] %s3052_s12  ;;  %p430_p10 = scmp.eq.s32.totalorder %s429_s24, 0 }
  0x2a   : > { %s457_s18 = sor.u32 %s455_s13, %s429_s24  ;;  %p2627_p12 = por %p470_p8, %p2589_p2 }
  0x2b   : > { %p458_p11 = scmp.eq.s32.totalorder %s457_s18, 0  ;;  %p2639_p13 = por %p476_p9, %p2604_p6 }
  0x2c   : > { %s3054_s14 = scalar_select %p2627_p12, 1, 0 }
  0x2d   : > { %s2632_s19 = scalar_select %p430_p10, %s2402_s26, %s432_s16  }
  0x2e   : > { %3055 = sst [smem:[#allocation23_spill]] %s3054_s14  ;;  %p1929_p0 = scmp.ge.s32.totalorder %s2422_s0, 1 }
  0x2f   : > { %3056 = sst [smem:[#allocation24_spill]] %s2632_s19  ;;  %p588_p1 = scmp.lt.s32.totalorder %s2422_s0, 5 }
  0x30   : > { %s2635_s29 = scalar_select %p458_p11, %s2390_s23, %s460_s11  }
  0x31   : > { %s3058_s10 = scalar_select %p2639_p13, 1, 0 }
  0x32   : > { %3057 = sst [smem:[#allocation25_spill]] %s2635_s29  ;;  %p589_p4 = pnand %p1929_p0, %p588_p1 }
  0x33   : > { %3059 = sst [smem:[#allocation26_spill]] %s3058_s10 }
  0x34   : > { %592 = sbr.rel (%p589_p4) target bundleno = 2953 (0xb89), region = 80 }
  0x39   : > { %s3006_s13 = sand.u32 1, %s2398_s25   ;;  %s3008_s11 = sand.u32 1, %s2386_s22  }
  0x3a   : > { %s1930_s15 = sshll.u32 %s3006_s13, 3  ;;  %s2651_s16 = sshll.u32 %s3008_s11, 3 }
  0x3b   : > { %p686_p2 = scmp.lt.s32.totalorder %s2410_s28, 1  ;;  %p690_p5 = scmp.lt.s32.totalorder %s2406_s27, 1 }
  0x3c   : > { %s3060_s11 = sld [smem:[#allocation28_spill]]  ;;  %s2716_s14 = scalar_lea.vmem [#allocation3], %s1930_s15 }
  0x3d   : > { %s687_s24 = scalar_select %p686_p2, %s2410_s28, 1 }
  0x3e   : > { %s2657_s17 = scalar_select %p690_p5, %s2406_s27, 1 }
  0x3f   : > { %s1932_s18 = sshll.u32 %s687_s24, 3  ;;  %s3061_s3 = sld [smem:[#allocation29_spill]] }
  0x40   : > { %s1986_s12 = sshll.u32 %s2657_s17, 4  ;;  %s3062_s5 = sld [smem:[#allocation30_spill]] }
  0x41   : > { %s2700_s24 = scalar_lea.vmem %s2991_s9, %s1986_s12  ;;  %s3066_s20 = sld [smem:[#allocation33_spill]] }
  0x42   : > { %s689_s30 = scalar_lea.vmem %s3060_s11, %s1932_s18  ;;  %s3067_s10 = sld [smem:[#allocation35_spill]] }
  0x43   : > { %s3068_s29 = sld [smem:[#allocation34_spill]]  ;;  %s685_s0 = scalar_lea.vmem [#allocation5], %s2651_s16 }
  0x44   : > { %p1941_p6 = scmp.ne.s32.totalorder %s2406_s27, 0 }
  0x45   : > { %s2674_s22 = scalar_lea.vmem %s3061_s3, %s1986_s12  ;;  %s717_s3 = scalar_lea.vmem %s2990_s8, %s2657_s17 }
  0x46   : > { %s2683_s26 = scalar_lea.vmem %s3062_s5, %s1986_s12  ;;  %738 = sbr.rel (%p1941_p6) target bundleno = 77 (0x4d), region = 84 }
  0x47   : > { %3063 = sst [smem:[#allocation27_spill]] %s2683_s26  ;;  %s725_s5 = scalar_lea.vmem %s3066_s20, %s2657_s17 }
  0x48   : > { %s1989_s26 = sshll.u32 %s2657_s17, 6  ;;  %s733_s6 = scalar_lea.vmem %s3067_s10, %s2657_s17 }
  0x49   : > { %s2714_s7 = scalar_lea.vmem %s3068_s29, %s1989_s26 }
  0x4b   : > { %v739_v0 = vld [vmem:[%s689_s30] sm:$0xff]  ;;  %vm740_vm0 = vcmask 261120  }
  0x4c   : > { %741 = vst.msk [vmem:[%s2716_s14] sm:$0xff] %vm740_vm0, %v739_v0 }
  0x4d PF: > { %vm745_vm1 = vcmask 261120   ;;  %v2232_v8 = vld [vmem:[%s2674_s22 + $0x8] sm:$0xff]   ;;  %v2424_v9 = vmov 0.0   ;;  %vm2425_vm2 = vmmov 0   ;;  %v2233_v10 = vld [vmem:[%s2674_s22] sm:$0xff]   ;;  %s3069_s28 = scalar_lea.vmem %s2983_s1, %s2657_s17  ;;  %s3070_s15 = scalar_lea.vmem %s2984_s2, %s2657_s17  ;;  %vm865_vm5 = vcmask 64512  }
  0x4e   : > { %2024 = vmatprep.subr.bf16.mxu0 %v2424_v9  ;;  %2028 = vmatprep.mubr.msk.bf16.mxu0 %vm2425_vm2, %v2424_v9  ;;  %v1942_v20 = vld [vmem:[%s3069_s28] ss:$0 sm:$0xff]  ;;  %s3071_s10 = scalar_lea.vmem %s2986_s4, %s2657_s17  ;;  %s2426_s25 = smov 96   ;;  %v854_v46 = vlaneseq  ;;  %vm930_vm7 = vcmask 1043456   ;;  %vm1091_vm8 = vcmask 130112   ;;  %vm1208_vm9 = vcmask 195712  }
  0x4f   : > { %2025 = vmatpush3.bf16.msra.mxu0 %v2232_v8  ;;  %2044 = vmatprep.subr.bf16.mxu1 %v2424_v9  ;;  %v1943_v22 = vld [vmem:[%s3070_s15] ss:$0 sm:$0xff]  ;;  %s2427_s13 = smov 120   ;;  %s2428_s11 = smov 88   ;;  %vm1325_vm10 = vcmask 261312   ;;  %vm852_vm11 = vcmask 523264  }
  0x50   : > { %2026 = vmatprep.subr.bf16.mxu0 %v2424_v9  ;;  %2046 = vmatprep.mubr.msk.bf16.mxu1 %vm2425_vm2, %v2424_v9  ;;  %v1944_v26 = vld [vmem:[%s3071_s10] ss:$0 sm:$0xff]  ;;  %s2429_s19 = smov 80   ;;  %s2430_s18 = smov 112   ;;  %v855_v47 = vshrl.u32 %v854_v46, 7  ;;  %v857_v48 = vand.u32 127, %v854_v46 }
  0x51   : > { %s2431_s21 = smov 72   ;;  %s2432_s23 = smov 104  }
  0x52   : > { %vm858_vm6 = vcmp.ge.s32.totalorder %v855_v47, %v857_v48  ;;  %s2433_s12 = smov 64   ;;  %s2434_s22 = smov 56  }
  0x53   : > { %v2722_v1 = vld [vmem:[%s2716_s14] sm:$0xff]  ;;  %2027 = vmatpush3.bf16.msra.mxu0 %v2233_v10  ;;  %s2435_s28 = smov 48   ;;  %s2436_s29 = smov 40  }
  0x54   : > { %v746_v2 = vsel %vm745_vm1, %v2722_v1, 0.0  ;;  %2032 = vmatprep.subr.bf16.mxu0 %v2424_v9  ;;  %s3072_s30 = sld [smem:[#allocation27_spill]]  ;;  %s2437_s15 = smov 8  }
  0x55   : > { %747 = vadd.xlane.f32.xlu0 %v746_v2  ;;  %s2438_s20 = smov 16   ;;  %s2439_s26 = smov 24  }
  0x56   : > { %p1975_p8 = scmp.ne.s32.totalorder %s2406_s27, 1 }
  0xde   : > { %v748_v3 = vpop.xlane.xlu0 %747 }
  0xdf   : > { %v750_v4 = vmul.f32 0.03125, %v748_v3 }
  0xe1   : > { %v751_v5 = vsub.f32 %v2722_v1, %v750_v4 }
  0xe3   : > { %v752_v6 = vmul.f32 %v751_v5, %v751_v5 }
  0xe5   : > { %v753_v7 = vsel %vm745_vm1, %v752_v6, 0.0 }
  0xe6   : > { %754 = vadd.xlane.f32.xlu0 %v753_v7 }
 0x16f   : > { %v755_v11 = vpop.xlane.xlu0 %754 }
 0x170   : > { %v756_v12 = vmul.f32 0.03125, %v755_v11 }
 0x172   : > { %v757_v13 = vadd.f32 1e-05, %v756_v12 }
 0x174   : > { %2246 = vrsqrt.f32 %v757_v13  ;;  %vm760_vm3 = vcmp.eq.f32.partialorder %v757_v13, inf  ;;  %v763_v16 = vand.u32 2147483648, %v757_v13  ;;  %vm762_vm4 = vcmp.eq.f32.partialorder %v757_v13, 0.0 }
 0x181   : > { %v2247_v14 = vpop.eup %2246 }
 0x182   : > { %v759_v15 = vmul.f32 %v2247_v14, %v757_v13 }
 0x184   : > { %v761_v17 = vsel %vm760_vm3, %v757_v13, %v759_v15 }
 0x185   : > { %v764_v18 = vsel %vm762_vm4, %v763_v16, %v761_v17 }
 0x186   : > { %2248 = vrcp.f32 %v764_v18 }
 0x193   : > { %v2249_v19 = vpop.eup %2248 }
 0x194   : > { %v766_v21 = vmul.f32 %v2249_v19, %v751_v5 }
 0x196   : > { %v773_v23 = vmul.f32 %v1942_v20, %v766_v21 }
 0x198   : > { %v780_v24 = vadd.f32 %v1943_v22, %v773_v23 }
 0x19a   : > { %v781_v25 = vpack.c.bf16 %v780_v24, %v780_v24 }
 0x19c   : > { %2029 = vmatmul.mubr.msk.bf16.vlgmr.msra.gmra.mxu0 %vm745_vm1, %v781_v25 }
 0x19d   : > { %2034 = vmatprep.mubr.msk.bf16.mxu0 %vm2425_vm2, %v2424_v9 }
 0x25c   : > { %v842_v27 = vpop.f32.mrf.mxu0 }
 0x25d   : > { %v2756_v28 = vadd.f32 %v1944_v26, %v842_v27 }
 0x25e   : > { %v2030_v29 = vpop.f32.mrf.mxu0 }
 0x25f   : > { %v859_v30 = vmul.f32 0.35355338, %v2756_v28  ;;  %v2761_v31 = vpack.c.bf16 %v2756_v28, %v2756_v28 }
 0x260   : > { %v845_v32 = vpop.f32.mrf.mxu0 }
 0x261   : > { %v860_v33 = vpack.c.bf16 %v859_v30, %v859_v30  ;;  %863 = vrot.lane.b32.xlu1 %v2761_v31, %s2426_s25 }
 0x262   : > { %v2031_v34 = vpop.f32.mrf.mxu0 }
 0x263   : > { %976 = vrot.lane.b32.xlu0 %v860_v33, %s2427_s13 }
 0x265   : > { %978 = vrot.lane.b32.xlu1 %v2761_v31, %s2428_s11  ;;  %s3073_s11 = sld [smem:[#allocation31_spill]] }
 0x269   : > { %1095 = vrot.lane.b32.xlu1 %v2761_v31, %s2429_s19 }
 0x26b   : > { %s3074_s19 = scalar_lea.vmem %s3073_s11, %s2657_s17 }
 0x26d   : > { %1093 = vrot.lane.b32.xlu1 %v860_v33, %s2430_s18  ;;  %s3075_s18 = sld [smem:[#allocation32_spill]] }
 0x271   : > { %1212 = vrot.lane.b32.xlu1 %v2761_v31, %s2431_s21 }
 0x273   : > { %s3076_s21 = scalar_lea.vmem %s3075_s18, %s2657_s17 }
 0x275   : > { %1210 = vrot.lane.b32.xlu1 %v860_v33, %s2432_s23 }
 0x2d3   : > { %v864_v35 = vpop.permute.xlu1 %863 }
 0x2d4   : > { %v870_v36 = vsel %vm865_vm5, %v864_v35, 0 }
 0x2d5   : > { %2033 = vmatpush3.bf16.xpose.msra.mxu0 %v870_v36  ;;  %v977_v40 = vpop.permute.xlu0 %976 }
 0x2d6   : > { %2038 = vmatprep.subr.bf16.mxu0 %v2424_v9 }
 0x2d7   : > { %v979_v37 = vpop.permute.xlu1 %978 }
 0x2d8   : > { %v984_v38 = vsel %vm865_vm5, %v979_v37, 0 }
 0x2d9   : > { %2045 = vmatpush3.bf16.xpose.msra.mxu1 %v984_v38 }
 0x2da   : > { %2056 = vmatprep.subr.bf16.mxu1 %v2424_v9 }
 0x2db   : > { %v1096_v39 = vpop.permute.xlu1 %1095 }
 0x2dc   : > { %2035 = vmatmul.mubr.msk.bf16.vlgmr.msra.gmra.mxu0 %vm865_vm5, %v860_v33  ;;  %v1101_v42 = vsel %vm865_vm5, %v1096_v39, 0 }
 0x2dd   : > { %2040 = vmatprep.mubr.msk.bf16.mxu0 %vm2425_vm2, %v2424_v9 }
 0x2df   : > { %v1094_v41 = vpop.permute.xlu1 %1093 }
 0x2e0   : > { %2047 = vmatmul.mubr.msk.bf16.vlgmr.msra.gmra.mxu1 %vm865_vm5, %v977_v40 }
 0x2e1   : > { %2057 = vmatpush3.bf16.xpose.msra.mxu1 %v1101_v42  ;;  %2058 = vmatprep.mubr.msk.bf16.mxu1 %vm2425_vm2, %v2424_v9 }
 0x2e2   : > { %2068 = vmatprep.subr.bf16.mxu1 %v2424_v9 }
 0x2e3   : > { %v1213_v43 = vpop.permute.xlu1 %1212 }
 0x2e4   : > { %v1218_v44 = vsel %vm865_vm5, %v1213_v43, 0 }
 0x2e7   : > { %v1211_v45 = vpop.permute.xlu1 %1210 }
 0x2e8   : > { %2059 = vmatmul.mubr.msk.bf16.vlgmr.msra.gmra.mxu1 %vm865_vm5, %v1094_v41 }
 0x2e9   : > { %2069 = vmatpush3.bf16.xpose.msra.mxu1 %v1218_v44  ;;  %2070 = vmatprep.mubr.msk.bf16.mxu1 %vm2425_vm2, %v2424_v9 }
 0x2ea   : > { %2080 = vmatprep.subr.bf16.mxu1 %v2424_v9 }
 0x2f0   : > { %2071 = vmatmul.mubr.msk.bf16.vlgmr.msra.gmra.mxu1 %vm865_vm5, %v1211_v45 }
 0x2f1   : > { %2084 = vmatprep.mubr.msk.bf16.mxu1 %vm2425_vm2, %v2424_v9 }
 0x39c   : > { %v906_v49 = vpop.f32.mrf.mxu0 }
 0x39d   : > { %v912_v50 = vsel %vm858_vm6, %v906_v49, -1e+10 }
 0x39e   : > { %v2036_v51 = vpop.f32.mrf.mxu0  ;;  %v913_v52 = vsel %vm865_vm5, %v912_v50, -inf }
 0x39f   : > { %914 = vmax.xlane.f32.xlu1 %v913_v52 }
 0x3a0   : > { %v909_v53 = vpop.f32.mrf.mxu0  ;;  %v1020_v54 = vpop.f32.mrf.mxu1 }
 0x3a1   : > { %v1026_v55 = vsel %vm858_vm6, %v1020_v54, -1e+10 }
 0x3a2   : > { %v2037_v56 = vpop.f32.mrf.mxu0  ;;  %v2048_v57 = vpop.f32.mrf.mxu1  ;;  %v1027_v58 = vsel %vm865_vm5, %v1026_v55, -inf }
 0x3a3   : > { %1028 = vmax.xlane.f32.xlu0 %v1027_v58 }
 0x3a4   : > { %v1023_v59 = vpop.f32.mrf.mxu1 }
 0x3a6   : > { %v2049_v60 = vpop.f32.mrf.mxu1 }
 0x3a8   : > { %v1137_v61 = vpop.f32.mrf.mxu1 }
 0x3a9   : > { %v1143_v62 = vsel %vm858_vm6, %v1137_v61, -1e+10 }
 0x3aa   : > { %v2060_v63 = vpop.f32.mrf.mxu1  ;;  %v1144_v0 = vsel %vm865_vm5, %v1143_v62, -inf }
 0x3ab   : > { %1145 = vmax.xlane.f32.xlu1 %v1144_v0  ;;  %v2234_v0 = vld [vmem:[%s3072_s30 + $0x8] sm:$0xff]  }
 0x3ac   : > { %v1140_v2 = vpop.f32.mrf.mxu1  ;;  %2081 = vmatpush3.bf16.msra.mxu1 %v2234_v0 }
 0x3ad   : > { %v2235_v2 = vld [vmem:[%s3072_s30] sm:$0xff]   ;;  %2082 = vmatprep.subr.bf16.mxu1 %v2424_v9  ;;  %s3079_s30 = sld [smem:[#allocation36_spill]] (!%p1975_p8) }
 0x3ae   : > { %v2061_v3 = vpop.f32.mrf.mxu1 }
 0x3b0   : > { %v1254_v4 = vpop.f32.mrf.mxu1  ;;  %2083 = vmatpush3.bf16.msra.mxu1 %v2235_v2 }
 0x3b1   : > { %v1260_v5 = vsel %vm858_vm6, %v1254_v4, -1e+10  ;;  %2096 = vmatprep.subr.bf16.mxu1 %v2424_v9 }
 0x3b2   : > { %v2072_v6 = vpop.f32.mrf.mxu1  ;;  %v1261_v7 = vsel %vm865_vm5, %v1260_v5, -inf }
 0x3b3   : > { %1262 = vmax.xlane.f32.xlu0 %v1261_v7 }
 0x3b4   : > { %v1257_v8 = vpop.f32.mrf.mxu1 }
 0x3b6   : > { %v2073_v10 = vpop.f32.mrf.mxu1 }
 0x428   : > { %v915_v11 = vpop.xlane.xlu1 %914 }
 0x429   : > { %v916_v12 = vsub.f32 %v912_v50, %v915_v11 }
 0x42b   : > { %v917_v13 = vmul.f32 1.442695, %v916_v12 }
 0x42c   : > { %v1029_v14 = vpop.xlane.xlu0 %1028 }
 0x42d   : > { %2250 = vpow2.f32 %v917_v13  ;;  %v1030_v15 = vsub.f32 %v1026_v55, %v1029_v14 }
 0x42f   : > { %v1031_v16 = vmul.f32 1.442695, %v1030_v15 }
 0x431   : > { %2252 = vpow2.f32 %v1031_v16 }
 0x434   : > { %v1146_v26 = vpop.xlane.xlu1 %1145 }
 0x435   : > { %v1147_v27 = vsub.f32 %v1143_v62, %v1146_v26 }
 0x437   : > { %v1148_v29 = vmul.f32 1.442695, %v1147_v27 }
 0x43a   : > { %v2251_v17 = vpop.eup %2250 }
 0x43b   : > { %v919_v18 = vsel %vm865_vm5, %v2251_v17, 0.0 }
 0x43c   : > { %v1263_v19 = vpop.xlane.xlu0 %1262  ;;  %920 = vadd.xlane.f32.xlu1 %v919_v18 }
 0x43d   : > { %v1264_v20 = vsub.f32 %v1260_v5, %v1263_v19 }
 0x43e   : > { %v2253_v21 = vpop.eup %2252 }
 0x43f   : > { %v1265_v22 = vmul.f32 1.442695, %v1264_v20  ;;  %v1033_v23 = vsel %vm865_vm5, %v2253_v21, 0.0 }
 0x440   : > { %1034 = vadd.xlane.f32.xlu0 %v1033_v23 }
 0x441   : > { %2254 = vpow2.f32 %v1265_v22 }
 0x442   : > { %2256 = vpow2.f32 %v1148_v29 }
 0x44d   : > { %925 = vrot.lane.b32.xlu1 %v2761_v31, %s2433_s12 }
 0x44e   : > { %v2255_v24 = vpop.eup %2254 }
 0x44f   : > { %v1267_v25 = vsel %vm865_vm5, %v2255_v24, 0.0  ;;  %v2257_v30 = vpop.eup %2256 }
 0x450   : > { %1268 = vadd.xlane.f32.xlu0 %v1267_v25  ;;  %v1150_v32 = vsel %vm865_vm5, %v2257_v30, 0.0 }
 0x466   : > { %1039 = vrot.lane.b32.xlu0 %v2761_v31, %s2434_s22 }
 0x471   : > { %1151 = vadd.xlane.f32.xlu1 %v1150_v32  ;;  %v2237_v32 = vld [vmem:[%s2700_s24] sm:$0xff]  }
 0x482   : > { %1156 = vrot.lane.b32.xlu1 %v2761_v31, %s2435_s28 }
 0x486   : > { %1273 = vrot.lane.b32.xlu1 %v2761_v31, %s2436_s29 }
 0x4c5   : > { %v921_v33 = vpop.xlane.xlu1 %920 }
 0x4c6   : > { %2258 = vrcp.f32 %v921_v33 }
 0x4c9   : > { %v1035_v34 = vpop.xlane.xlu0 %1034  ;;  %v926_v35 = vpop.permute.xlu1 %925 }
 0x4ca   : > { %v932_v36 = vsel %vm930_vm7, %v926_v35, 0  ;;  %2260 = vrcp.f32 %v1035_v34 }
 0x4cb   : > { %2039 = vmatpush3.bf16.msra.mxu0 %v932_v36 }
 0x4cc   : > { %2050 = vmatprep.subr.bf16.mxu0 %v2424_v9 }
 0x4d3   : > { %v2259_v37 = vpop.eup %2258 }
 0x4d4   : > { %v923_v38 = vmul.f32 %v2259_v37, %v2251_v17  ;;  %v1956_v17 = vld [vmem:[%s3074_s19] ss:$0 sm:$0xff] }
 0x4d6   : > { %v924_v39 = vpack.c.bf16 %v923_v38, %v923_v38 }
 0x4d7   : > { %v2261_v40 = vpop.eup %2260 }
 0x4d8   : > { %2041 = vmatmul.mubr.msk.bf16.vlgmr.msra.gmra.mxu0 %vm865_vm5, %v924_v39  ;;  %v1037_v31 = vmul.f32 %v2261_v40, %v2253_v21 }
 0x4d9   : > { %v1269_v41 = vpop.xlane.xlu0 %1268  ;;  %2052 = vmatprep.mubr.msk.bf16.mxu0 %vm2425_vm2, %v2424_v9 }
 0x4da   : > { %v1038_v44 = vpack.c.bf16 %v1037_v31, %v1037_v31  ;;  %v1960_v31 = vld [vmem:[%s3076_s21] ss:$0 sm:$0xff] }
 0x4dd   : > { %v1040_v42 = vpop.permute.xlu0 %1039 }
 0x4de   : > { %v1045_v43 = vsel %vm930_vm7, %v1040_v42, 0 }
 0x4df   : > { %2051 = vmatpush3.bf16.msra.mxu0 %v1045_v43  ;;  %v1961_v43 = vld [vmem:[%s717_s3] ss:$0 sm:$0xff] }
 0x4e0   : > { %2062 = vmatprep.subr.bf16.mxu0 %v2424_v9 }
 0x4e2   : > { %2053 = vmatmul.mubr.msk.bf16.vlgmr.msra.gmra.mxu0 %vm865_vm5, %v1038_v44 }
 0x4e3   : > { %2064 = vmatprep.mubr.msk.bf16.mxu0 %vm2425_vm2, %v2424_v9 }
 0x4fa   : > { %v1152_v45 = vpop.xlane.xlu1 %1151 }
 0x4fb   : > { %2262 = vrcp.f32 %v1152_v45 }
 0x4fc   : > { %2264 = vrcp.f32 %v1269_v41 }
 0x4fe   : > { %v1157_v46 = vpop.permute.xlu1 %1156 }
 0x4ff   : > { %v1162_v47 = vsel %vm930_vm7, %v1157_v46, 0 }
 0x500   : > { %2063 = vmatpush3.bf16.msra.mxu0 %v1162_v47  ;;  %v2238_v47 = vld [vmem:[%s2714_s7 + $0x38] sm:$0xff]  }
 0x501   : > { %2074 = vmatprep.subr.bf16.mxu0 %v2424_v9 }
 0x502   : > { %v1274_v50 = vpop.permute.xlu1 %1273 }
 0x503   : > { %v1279_v53 = vsel %vm930_vm7, %v1274_v50, 0  ;;  %v2241_v50 = vld [vmem:[%s2714_s7 + $0x20] sm:$0xff]  }
 0x508   : > { %v2263_v48 = vpop.eup %2262 }
 0x509   : > { %v1154_v49 = vmul.f32 %v2263_v48, %v2257_v30  ;;  %v2265_v52 = vpop.eup %2264  ;;  %v2239_v48 = vld [vmem:[%s2714_s7 + $0x30] sm:$0xff]  }
 0x50a   : > { %v1271_v54 = vmul.f32 %v2265_v52, %v2255_v24  ;;  %v2243_v52 = vld [vmem:[%s2714_s7 + $0x10] sm:$0xff]  }
 0x50b   : > { %v1155_v51 = vpack.c.bf16 %v1154_v49, %v1154_v49  ;;  %v2240_v49 = vld [vmem:[%s2714_s7 + $0x28] sm:$0xff]  }
 0x50c   : > { %v1272_v55 = vpack.c.bf16 %v1271_v54, %v1271_v54  ;;  %v2245_v54 = vld [vmem:[%s2714_s7] sm:$0xff]  }
 0x50d   : > { %2065 = vmatmul.mubr.msk.bf16.vlgmr.msra.gmra.mxu0 %vm865_vm5, %v1155_v51  ;;  %v2242_v51 = vld [vmem:[%s2714_s7 + $0x18] sm:$0xff]  }
 0x50e   : > { %2075 = vmatpush3.bf16.msra.mxu0 %v1279_v53  ;;  %2076 = vmatprep.mubr.msk.bf16.mxu0 %vm2425_vm2, %v2424_v9  ;;  %v2244_v53 = vld [vmem:[%s2714_s7 + $0x8] sm:$0xff]  }
 0x50f   : > { %2088 = vmatprep.subr.bf16.mxu0 %v2424_v9 }
 0x515   : > { %2077 = vmatmul.mubr.msk.bf16.vlgmr.msra.gmra.mxu0 %vm865_vm5, %v1272_v55  ;;  %v1962_v55 = vld [vmem:[%s725_s5] ss:$0 sm:$0xff] }
 0x516   : > { %2092 = vmatprep.mubr.msk.bf16.mxu0 %vm2425_vm2, %v2424_v9 }
 0x598   : > { %v968_v56 = vpop.f32.mrf.mxu0 }
 0x599   : > { %974 = vst.msk [vmem:[#allocation2] sm:$0xff] %vm865_vm5, %v968_v56 }
 0x59a   : > { %v2042_v57 = vpop.f32.mrf.mxu0 }
 0x59c   : > { %v971_v58 = vpop.f32.mrf.mxu0 }
 0x59e   : > { %v2043_v59 = vpop.f32.mrf.mxu0 }
 0x5a2   : > { %v1081_v60 = vpop.f32.mrf.mxu0 }
 0x5a3   : > { %1088 = vrot.lane.b32.xlu0 %v1081_v60, %s2437_s15 }
 0x5a4   : > { %v2054_v61 = vpop.f32.mrf.mxu0 }
 0x5a6   : > { %v1084_v62 = vpop.f32.mrf.mxu0 }
 0x5a8   : > { %v2055_v63 = vpop.f32.mrf.mxu0 }
 0x5cd   : > { %v1198_v3 = vpop.f32.mrf.mxu0 }
 0x5ce   : > { %1205 = vrot.lane.b32.xlu1 %v1198_v3, %s2438_s20 }
 0x5cf   : > { %v2066_v4 = vpop.f32.mrf.mxu0 }
 0x5d1   : > { %v1201_v5 = vpop.f32.mrf.mxu0 }
 0x5d3   : > { %v2067_v6 = vpop.f32.mrf.mxu0 }
 0x5d5   : > { %v1315_v7 = vpop.f32.mrf.mxu0 }
 0x5d6   : > { %1322 = vrot.lane.b32.xlu0 %v1315_v7, %s2439_s26  ;;  %v1966_v7 = vld [vmem:[%s733_s6] ss:$0 sm:$0xff]  ;;  %s3080_s26 = sld [smem:[#allocation37_spill]] (!%p1975_p8) }
 0x5d7   : > { %v2078_v8 = vpop.f32.mrf.mxu0 }
 0x5d9   : > { %v1318_v10 = vpop.f32.mrf.mxu0 }
 0x5db   : > { %v2079_v11 = vpop.f32.mrf.mxu0 }
 0x615   : > { %v1089_v12 = vpop.permute.xlu0 %1088 }
 0x616   : > { %1092 = vst.msk [vmem:[#allocation2] sm:$0xff] %vm1091_vm8, %v1089_v12 }
 0x640   : > { %v1206_v13 = vpop.permute.xlu1 %1205 }
 0x641   : > { %1209 = vst.msk [vmem:[#allocation2] sm:$0xff] %vm1208_vm9, %v1206_v13 }
 0x648   : > { %v1323_v14 = vpop.permute.xlu0 %1322 }
 0x649   : > { %1326 = vst.msk [vmem:[#allocation2] sm:$0xff] %vm1325_vm10, %v1323_v14 }
 0x650   : > { %v1327_v15 = vld [vmem:[#allocation2] sm:$0xff] }
 0x651   : > { %v1328_v16 = vpack.c.bf16 %v1327_v15, %v1327_v15 }
 0x653   : > { %2085 = vmatmul.mubr.msk.bf16.vlgmr.msra.gmra.mxu1 %vm745_vm1, %v1328_v16 }
 0x654   : > { %2112 = vmatprep.mubr.msk.bf16.mxu1 %vm2425_vm2, %v2424_v9  ;;  %2097 = vmatpush3.bf16.msra.mxu1 %v2238_v47 }
 0x655   : > { %2098 = vmatprep.subr.bf16.mxu1 %v2424_v9 }
 0x658   : > { %2099 = vmatpush3.bf16.msra.mxu1 %v2239_v48 }
 0x659   : > { %2100 = vmatprep.subr.bf16.mxu1 %v2424_v9 }
 0x65c   : > { %2101 = vmatpush3.bf16.msra.mxu1 %v2240_v49 }
 0x65d   : > { %2102 = vmatprep.subr.bf16.mxu1 %v2424_v9 }
 0x660   : > { %2103 = vmatpush3.bf16.msra.mxu1 %v2241_v50 }
 0x661   : > { %2104 = vmatprep.subr.bf16.mxu1 %v2424_v9 }
 0x664   : > { %2105 = vmatpush3.bf16.msra.mxu1 %v2242_v51 }
 0x665   : > { %2106 = vmatprep.subr.bf16.mxu1 %v2424_v9 }
 0x668   : > { %2107 = vmatpush3.bf16.msra.mxu1 %v2243_v52 }
 0x669   : > { %2108 = vmatprep.subr.bf16.mxu1 %v2424_v9 }
 0x66c   : > { %2109 = vmatpush3.bf16.msra.mxu1 %v2244_v53 }
 0x66d   : > { %2110 = vmatprep.subr.bf16.mxu1 %v2424_v9 }
 0x670   : > { %2111 = vmatpush3.bf16.msra.mxu1 %v2245_v54 }
 0x713   : > { %v1389_v18 = vpop.f32.mrf.mxu1 }
 0x714   : > { %v1390_v19 = vadd.f32 %v1956_v17, %v1389_v18 }
 0x715   : > { %v2086_v20 = vpop.f32.mrf.mxu1 }
 0x716   : > { %v2838_v21 = vadd.f32 %v1390_v19, %v2722_v1  ;;  %v2236_v1 = vld [vmem:[%s2700_s24 + $0x8] sm:$0xff]  }
 0x717   : > { %v1392_v22 = vpop.f32.mrf.mxu1  ;;  %2089 = vmatpush3.bf16.msra.mxu0 %v2236_v1 }
 0x718   : > { %v1398_v23 = vsel %vm745_vm1, %v2838_v21, 0.0  ;;  %2090 = vmatprep.subr.bf16.mxu0 %v2424_v9 }
 0x719   : > { %1399 = vadd.xlane.f32.xlu1 %v1398_v23  ;;  %v2087_v24 = vpop.f32.mrf.mxu1 }
 0x71b   : > { %2091 = vmatpush3.bf16.msra.mxu0 %v2237_v32 }
 0x7a2   : > { %v1400_v25 = vpop.xlane.xlu1 %1399 }
 0x7a3   : > { %v1401_v26 = vmul.f32 0.03125, %v1400_v25 }
 0x7a5   : > { %v1402_v27 = vsub.f32 %v2838_v21, %v1401_v26 }
 0x7a7   : > { %v1403_v29 = vmul.f32 %v1402_v27, %v1402_v27 }
 0x7a9   : > { %v1404_v30 = vsel %vm745_vm1, %v1403_v29, 0.0 }
 0x7aa   : > { %1405 = vadd.xlane.f32.xlu0 %v1404_v30 }
 0x7c0   : > { %849 = vrot.lane.b32.xlu0 %v2756_v28, %s2426_s25 }
 0x833   : > { %v1406_v33 = vpop.xlane.xlu0 %1405 }
 0x834   : > { %v1407_v34 = vmul.f32 0.03125, %v1406_v33 }
 0x836   : > { %v1408_v35 = vadd.f32 1e-05, %v1407_v34 }
 0x837   : > { %v850_v36 = vpop.permute.xlu0 %849 }
 0x838   : > { %2266 = vrsqrt.f32 %v1408_v35  ;;  %853 = vst.msk [vmem:[%s685_s0] sm:$0xff] %vm852_vm11, %v850_v36  ;;  %vm1411_vm12 = vcmp.eq.f32.partialorder %v1408_v35, inf  ;;  %v1414_v28 = vand.u32 2147483648, %v1408_v35  ;;  %vm1413_vm13 = vcmp.eq.f32.partialorder %v1408_v35, 0.0 }
 0x845   : > { %v2267_v37 = vpop.eup %2266 }
 0x846   : > { %v1410_v38 = vmul.f32 %v2267_v37, %v1408_v35 }
 0x848   : > { %v1412_v39 = vsel %vm1411_vm12, %v1408_v35, %v1410_v38 }
 0x849   : > { %v1415_v40 = vsel %vm1413_vm13, %v1414_v28, %v1412_v39 }
 0x84a   : > { %2268 = vrcp.f32 %v1415_v40 }
 0x857   : > { %v2269_v41 = vpop.eup %2268 }
 0x858   : > { %v1417_v42 = vmul.f32 %v2269_v41, %v1402_v27 }
 0x85a   : > { %v1424_v44 = vmul.f32 %v1960_v31, %v1417_v42 }
 0x85c   : > { %v1431_v45 = vadd.f32 %v1961_v43, %v1424_v44 }
 0x85e   : > { %v1432_v46 = vpack.c.bf16 %v1431_v45, %v1431_v45 }
 0x860   : > { %2093 = vmatmul.mubr.msk.bf16.vlgmr.msra.gmra.mxu0 %vm745_vm1, %v1432_v46 }
 0x920   : > { %v1493_v56 = vpop.f32.mrf.mxu0 }
 0x921   : > { %v1494_v57 = vadd.f32 %v1962_v55, %v1493_v56 }
 0x922   : > { %v2094_v58 = vpop.f32.mrf.mxu0 }
 0x923   : > { %v1500_v59 = vmul.f32 0.044715, %v1494_v57  ;;  %v1499_v9 = vmul.f32 0.5, %v1494_v57 }
 0x924   : > { %v1496_v60 = vpop.f32.mrf.mxu0 }
 0x925   : > { %v1501_v61 = vmul.f32 %v1500_v59, %v1494_v57 }
 0x926   : > { %v2095_v62 = vpop.f32.mrf.mxu0 }
 0x927   : > { %v1502_v63 = vmul.f32 %v1501_v61, %v1494_v57 }
 0x929   : > { %v1503_v0 = vadd.f32 %v1502_v63, %v1494_v57 }
 0x92b   : > { %v1504_v2 = vmul.f32 0.7978846, %v1503_v0 }
 0x92d   : > { %2270 = vtanh.f32 %v1504_v2 }
 0x93a   : > { %v2271_v3 = vpop.eup %2270 }
 0x93b   : > { %v1506_v4 = vadd.f32 1.0, %v2271_v3 }
 0x93d   : > { %v1507_v5 = vmul.f32 %v1506_v4, %v1499_v9 }
 0x93f   : > { %v1508_v6 = vpack.c.bf16 %v1507_v5, %v1507_v5 }
 0x941   : > { %2113 = vmatmul.mubr.bf16.vlgmr.msra.gmra.mxu1 %v1508_v6 }
 0xa01   : > { %v1614_v8 = vpop.f32.mrf.mxu1 }
 0xa02   : > { %v1615_v10 = vadd.f32 %v1966_v7, %v1614_v8 }
 0xa03   : > { %v2114_v11 = vpop.f32.mrf.mxu1  ;;  %1624 = sbr.rel (%p1975_p8) target bundleno = 2895 (0xb4f), region = 88 }
 0xa04   : > { %v1620_v12 = vadd.f32 %v1615_v10, %v2838_v21 }
 0xa05   : > { %v1617_v13 = vpop.f32.mrf.mxu1 }
 0xa07   : > { %v2115_v14 = vpop.f32.mrf.mxu1 }
 0xa08   : > { %v1627_v15 = vsel %vm745_vm1, %v1620_v12, 0.0  ;;  %v1976_v1 = vld [vmem:[%s3079_s30] ss:$0 sm:$0xff] }
 0xa09   : > { %1628 = vadd.xlane.f32.xlu0 %v1627_v15  ;;  %v1977_v33 = vld [vmem:[%s3080_s26] ss:$0 sm:$0xff] }
 0xa92   : > { %v1629_v16 = vpop.xlane.xlu0 %1628 }
 0xa93   : > { %v1630_v17 = vmul.f32 0.03125, %v1629_v16 }
 0xa95   : > { %v1631_v18 = vsub.f32 %v1620_v12, %v1630_v17 }
 0xa97   : > { %v1632_v19 = vmul.f32 %v1631_v18, %v1631_v18 }
 0xa99   : > { %v1633_v20 = vsel %vm745_vm1, %v1632_v19, 0.0 }
 0xa9a   : > { %1634 = vadd.xlane.f32.xlu0 %v1633_v20 }
 0xb23   : > { %v1635_v22 = vpop.xlane.xlu0 %1634 }
 0xb24   : > { %v1636_v23 = vmul.f32 0.03125, %v1635_v22 }
 0xb26   : > { %v1637_v24 = vadd.f32 1e-05, %v1636_v23 }
 0xb28   : > { %2272 = vrsqrt.f32 %v1637_v24  ;;  %vm1640_vm14 = vcmp.eq.f32.partialorder %v1637_v24, inf  ;;  %v1643_v26 = vand.u32 2147483648, %v1637_v24  ;;  %vm1642_vm15 = vcmp.eq.f32.partialorder %v1637_v24, 0.0 }
 0xb35   : > { %v2273_v21 = vpop.eup %2272 }
 0xb36   : > { %v1639_v25 = vmul.f32 %v2273_v21, %v1637_v24 }
 0xb38   : > { %v1641_v27 = vsel %vm1640_vm14, %v1637_v24, %v1639_v25 }
 0xb39   : > { %v1644_v29 = vsel %vm1642_vm15, %v1643_v26, %v1641_v27 }
 0xb3a   : > { %2274 = vrcp.f32 %v1644_v29 }
 0xb47   : > { %v2275_v30 = vpop.eup %2274 }
 0xb48   : > { %v1646_v32 = vmul.f32 %v2275_v30, %v1631_v18 }
 0xb4a   : > { %v1653_v34 = vmul.f32 %v1976_v1, %v1646_v32 }
 0xb4c   : > { %v1660_v35 = vadd.f32 %v1977_v33, %v1653_v34 }
 0xb4e   : > { %1661 = vst.msk [vmem:[%s2716_s14] sm:$0xff] %vm745_vm1, %v1660_v35 }
 0xb4f PF: > { %p1978_p9 = scmp.ge.s32.totalorder %s2406_s27, 1 }
 0xb51   : > { %1665 = sbr.rel (%p1978_p9) target bundleno = 2903 (0xb57), region = 92 }
 0xb56   : > { %1666 = vst.msk [vmem:[%s2716_s14] sm:$0xff] %vm745_vm1, %v1620_v12 }
 0xb57 PF: > { %s3081_s10 = sld [smem:[#allocation15_spill]]  ;;  %s1686_s23 = sshll.u32 %s2716_s14, 4  ;;  %s1687_s23 = int_to_ptr.vmem [resolvable:$true] %s1686_s23 }
 0xb58   : > { %s3082_s13 = sld [smem:[#allocation13_spill]]  ;;  %s2276_s22 = scalar_lea.vmem %s1687_s23, 128 }
 0xb59   : > { %s3084_s18 = sld [smem:[#allocation38_spill]]  ;;  %p2277_p10 = scmp.ne.s32.totalorder %s1687_s23, %s2276_s22 }
 0xb5a   : > { %s2440_s28 = smov [#allocation3]  }
 0xb5b   : > { %p2278_p11 = pnand %p2277_p10, %p2598_p3  ;;  %s2280_s7 = sshll.u32 %s2440_s28, 4  ;;  %s2281_s7 = int_to_ptr.vmem [resolvable:$false] %s2280_s7 }
 0xb5c   : > { %s2282_s5 = scalar_lea.vmem %s2281_s7, 256  ;;  %p2283_p1 = scmp.lt.s32.totalorder %s1687_s23, %s2281_s7 }
 0xb5d   : > { %s1981_s19 = sshll.u32 %s3081_s10, 7  ;;  %p2279_p0 = pneg %p2278_p11 }
 0xb5e   : > { %s3085_s12 = sand.u32 1, %s3082_s13   ;;  %p2284_p4 = scmp.lt.s32.totalorder %s2282_s5, %s2276_s22 }
 0xb5f   : > { %s1684_s21 = scalar_lea.hbm %s3084_s18, %s1981_s19  ;;  %s1668_s3 = scalar_lea.sflag [#allocation4], %s3085_s12 }
 0xb60   : > { %p2285_p2 = por %p2284_p4, %p2283_p1 }
 0xb62   : > { %p2286_p5 = pnand %p2285_p2, %p2279_p0 }
 0xb64   : > { %2289 = shalt.err (!%p2286_p5)
}
 0xb65   : > { %s2290_s29 = scalar_lea.hbm %s1684_s21, 128  ;;  %s2294_s17 = scalar_lea.hbm %s3084_s18, 256 }
 0xb66   : > { %p2291_p6 = scmp.ne.s32.totalorder %s1684_s21, %s2290_s29  ;;  %p2295_p10 = scmp.lt.s32.totalorder %s1684_s21, %s3084_s18 }
 0xb67   : > { %p2296_p11 = scmp.lt.s32.totalorder %s2294_s17, %s2290_s29 }
 0xb68   : > { %p2292_p8 = pnand %p2291_p6, %p2598_p3 }
 0xb69   : > { %p2297_p13 = por %p2296_p11, %p2295_p10 }
 0xb6a   : > { %p2293_p9 = pneg %p2292_p8 }
 0xb6c   : > { %p2298_p7 = pnand %p2297_p13, %p2293_p9 }
 0xb6e   : > { %2301 = shalt.err (!%p2298_p7)
}
 0xb6f   : > { %s3086_s20 = sld [smem:[#allocation10_spill]]  ;;  %s1982_s13 = sshll.u32 %s2406_s27, 1 }
 0xb70   : > { %2116 = dma.vmem_to_hbm [thread:$0]  (%p2598_p3), %s1687_s23, 128, %s1684_s21, %s1668_s3  }
 0xb71   : > { %s1701_s19 = sshll.u32 %s685_s0, 4  ;;  %s1697_s24 = sadd.s32 %s3081_s10, %s1982_s13  ;;  %s1702_s19 = int_to_ptr.vmem [resolvable:$true] %s1701_s19 }
 0xb72   : > { %s1983_s25 = sshll.u32 %s1697_s24, 7  ;;  %s3088_s28 = sld [smem:[#allocation39_spill]] }
 0xb73   : > { %s2302_s6 = scalar_lea.vmem %s1702_s19, 128  ;;  %s2441_s11 = smov [#allocation5]  }
 0xb74   : > { %p2303_p7 = scmp.ne.s32.totalorder %s1702_s19, %s2302_s6  ;;  %s2306_s17 = sshll.u32 %s2441_s11, 4  ;;  %s2307_s17 = int_to_ptr.vmem [resolvable:$false] %s2306_s17 }
 0xb75   : > { %s3090_s29 = sand.u32 1, %s3086_s20   ;;  %s2308_s27 = scalar_lea.vmem %s2307_s17, 256 }
 0xb76   : > { %s1673_s14 = scalar_lea.sflag [#allocation6], %s3090_s29  ;;  %p2304_p13 = pnand %p2303_p7, %p2627_p12 }
 0xb77   : > { %p2309_p3 = scmp.lt.s32.totalorder %s1702_s19, %s2307_s17  ;;  %p2310_p1 = scmp.lt.s32.totalorder %s2308_s27, %s2302_s6 }
 0xb78   : > { %s3089_s7 = smov %s3088_s28  ;;  %s1699_s5 = scalar_lea.hbm %s3088_s28, %s1983_s25 }
 0xb79   : > { %p2305_p0 = pneg %p2304_p13  ;;  %p2311_p4 = por %p2310_p1, %p2309_p3 }
 0xb7b   : > { %p2312_p2 = pnand %p2311_p4, %p2305_p0 }
 0xb7d   : > { %2315 = shalt.err (!%p2312_p2)
}
 0xb7e   : > { %s2316_s16 = scalar_lea.hbm %s1699_s5, 128  ;;  %s2320_s21 = scalar_lea.hbm %s3089_s7, 512 }
 0xb7f   : > { %p2317_p5 = scmp.ne.s32.totalorder %s1699_s5, %s2316_s16  ;;  %p2321_p9 = scmp.lt.s32.totalorder %s1699_s5, %s3089_s7 }
 0xb80   : > { %p2322_p10 = scmp.lt.s32.totalorder %s2320_s21, %s2316_s16 }
 0xb81   : > { %p2318_p6 = pnand %p2317_p5, %p2627_p12 }
 0xb82   : > { %p2323_p11 = por %p2322_p10, %p2321_p9 }
 0xb83   : > { %p2319_p8 = pneg %p2318_p6 }
 0xb85   : > { %p2324_p7 = pnand %p2323_p11, %p2319_p8 }
 0xb87   : > { %2327 = shalt.err (!%p2324_p7)
}
 0xb88   : > { %2117 = dma.vmem_to_hbm [thread:$0]  (%p2627_p12), %s1702_s19, 128, %s1699_s5, %s1673_s14  }
 0xb89 PF: > { %s3091_s30 = sld [smem:[#allocation18_spill]] }
 0xb8a   : > { %s3092_s15 = sld [smem:[#allocation12_spill]] }
 0xb8b   : > { %s3093_s20 = sld [smem:[#allocation22_spill]] }
 0xb8f   : > { %p2127_p13 = scmp.ge.s32.totalorder %s3091_s30, 2 }
 0xb90   : > { %s1713_s13 = sand.u32 1, %s3092_s15  }
 0xb91   : > { %p3094_p0 = scmp.ne.s32.totalorder %s3093_s20, 0  ;;  %s1714_s24 = scalar_lea.sflag [#allocation4], %s1713_s13 }
 0xb93   : > { %p2121_p3 = pnand %p2127_p13, %p3094_p0 }
 0xb95   : > { %p2122_p1 = pneg %p2121_p3 }
 0xb97   : > { %2373 = dma.done.wait (%p2122_p1), %s1714_s24, 128  }
 0xb98   : > { %2375 = vsyncadd (%p2122_p1), %s1714_s24, 4294967168  ;;  %s3095_s25 = sld [smem:[#allocation9_spill]] }
 0xb99   : > { %s3096_s12 = sld [smem:[#allocation26_spill]] }
 0xb9e   : > { %s1722_s22 = sand.u32 1, %s3095_s25  }
 0xb9f   : > { %p3097_p4 = scmp.ne.s32.totalorder %s3096_s12, 0  ;;  %s1723_s26 = scalar_lea.sflag [#allocation6], %s1722_s22 }
 0xba1   : > { %p2124_p2 = pnand %p2127_p13, %p3097_p4 }
 0xba3   : > { %p2125_p5 = pneg %p2124_p2 }
 0xba5   : > { %2377 = dma.done.wait (%p2125_p5), %s1723_s26, 128  }
 0xba6   : > { %2379 = vsyncadd (%p2125_p5), %s1723_s26, 4294967168  ;;  %s33_s0 = sadd.s32 1, %s3091_s30   ;;  %s3098_s21 = sld [smem:[#allocation10_spill]] }
 0xba7   : > { %p30_p12 = scmp.ge.s32.totalorder %s33_s0, 6   ;;  %s3099_s22 = sld [smem:[#allocation11_spill]] }
 0xba8   : > { %s3100_s23 = sld [smem:[#allocation25_spill]] }
 0xba9   : > { %s3101_s24 = sld [smem:[#allocation13_spill]] }
 0xbaa   : > { %s3102_s25 = sld [smem:[#allocation14_spill]] }
 0xbab   : > { %s3103_s26 = sld [smem:[#allocation24_spill]]  ;;  %32 = sbr.rel (!%p30_p12) target bundleno = 22 (0x16), region = 180 }
 0xbac   : > { %s3104_s27 = sld [smem:[#allocation16_spill]] }
 0xbad   : > { %s3105_s28 = sld [smem:[#allocation17_spill]] }
 0xbae   : > { %s3106_s29 = sld [smem:[#allocation19_spill]] }
 0xbaf   : > { %s3107_s30 = sld [smem:[#allocation21_spill]] }
 0xbb0   :  { %1728 = vsyncpa [#allocation4], 1 }
 0xbb1   :  { %1730 = vsyncpa [#allocation4 + $0x1], 1 }
 0xbb2   :  { %1731 = vsyncpa [#allocation6], 1 }
 0xbb3   :  { %1733 = vsyncpa [#allocation6 + $0x1], 1 }

</bundles_post_ra>
